<compile_context>
chip_gen: v7x
topology: tpu7x:2x2x1
jax: 0.10.0
libtpu: 0.0.40
codegen_flags: <defaults>
</compile_context>

<pallas_src>
import functools

import numpy as np
import jax
import jax.numpy as jnp
from jax.experimental import pallas as pl
from jax.experimental.pallas import tpu as pltpu

EPS = 1e-5          # InstanceNorm eps (nnU-Net default)
NEG_SLOPE = 1e-2    # LeakyReLU negative slope (nnU-Net default)


# ----------------------------------------------------------------------------
# Fused Pallas kernel: Conv3d + InstanceNorm + LeakyReLU + residual + MaxPool
# ----------------------------------------------------------------------------
def _make_fused_call(N, C, D, H, W, KD, KH, KW):
    assert D % 2 == 0 and H % 2 == 0 and W % 2 == 0, "MaxPool3d(2,2) needs even dims"
    S = D * H * W
    Do, Ho, Wo = D // 2, H // 2, W // 2
    Po = Do * Ho * Wo
    KT = KD * KH * KW
    inv_s = 1.0 / float(S)
    pd, ph, pw = (KD - 1) // 2, (KH - 1) // 2, (KW - 1) // 2

    def kernel(x_ref, w_ref, g_ref, be_ref, di_ref, hi_ref, wi_ref, s0_ref,
               c2_ref, pool_ref, patch_ref):
        x = x_ref[0]                                           # (C, S) f32

        # ---- in-kernel im2col: KT lane-rolled, boundary-masked taps --------
        # Per-lane (d,h,w) coordinates come in as tiny precomputed i32 vectors
        # (avoids integer div/mod on the VPU).
        di, hi, wi = di_ref[...], hi_ref[...], wi_ref[...]     # (1, S) i32

        def axis_masks(idx, dim, ksz, pad):
            ms = []
            for k in range(ksz):
                o = k - pad
                ms.append(None if o == 0 else ((idx + o >= 0) & (idx + o < dim)))
            return ms

        md = axis_masks(di, D, KD, pd)
        mh = axis_masks(hi, H, KH, ph)
        mw = axis_masks(wi, W, KW, pw)

        t = 0
        for kd in range(KD):
            od = kd - pd
            for kh in range(KH):
                oh = kh - ph
                for kw in range(KW):
                    ow = kw - pw
                    off = od * H * W + oh * W + ow
                    # tap[s] = x[s + off]  (circular wrap is masked to zero below)
                    tap = x if off == 0 else pltpu.roll(x, (-off) % S, axis=1)
                    mask = None
                    for m in (md[kd], mh[kh], mw[kw]):
                        if m is not None:
                            mask = m if mask is None else (mask & m)
                    if mask is not None:
                        tap = jnp.where(mask, tap, 0.0)        # zero padding
                    patch_ref[t * C:(t + 1) * C, :] = tap      # (C, S) slab
                    t += 1

        # ---- Conv3d as ONE MXU matmul: (C, KT*C) @ (KT*C, S) ----------------
        # bf16 operands, f32 accumulation (InstanceNorm renormalizes the result).
        acc = jnp.dot(w_ref[...].astype(jnp.bfloat16),
                      patch_ref[...].astype(jnp.bfloat16),
                      preferred_element_type=jnp.float32)      # (C, S)

        # ---- InstanceNorm3d (affine), two-pass variance ----------------------
        # Conv bias omitted: the mean subtraction removes any per-channel
        # constant exactly.
        mean = jnp.sum(acc, axis=1, keepdims=True) * inv_s     # (C, 1)
        cen = acc - mean
        var = jnp.sum(cen * cen, axis=1, keepdims=True) * inv_s
        y = cen * jax.lax.rsqrt(var + EPS)
        y = y * g_ref[...] + be_ref[...]
        y = jnp.where(y >= 0, y, NEG_SLOPE * y)                # LeakyReLU(0.01)

        # ---- concat_2 = out_1 + 2 * x  (concat_1 never materialized) --------
        c2 = y + 2.0 * x
        c2_ref[0] = c2.astype(c2_ref.dtype)

        # ---- Fused MaxPool3d(2, stride=2) ------------------------------------
        # 7 lane rolls (XLU) build the dilated window max; one tiny 0/1
        # selection dot (built in-kernel from iota, no HBM constant) extracts
        # the even-(d,h,w) positions into a (C, Po) result.
        m = c2
        for off in (1, W, W + 1, H * W, H * W + 1, H * W + W, H * W + W + 1):
            m = jnp.maximum(m, pltpu.roll(c2, (S - off) % S, axis=1))
        row = jax.lax.broadcasted_iota(jnp.int32, (S, Po), 0)  # flat index per row
        sel = (row == s0_ref[...]).astype(jnp.float32)         # exact 0/1, (S, Po)
        pooled = jnp.dot(m, sel, preferred_element_type=jnp.float32)   # (C, Po)
        pool_ref[0] = pooled.astype(pool_ref.dtype)

    # TODO(synk): for real nnU-Net patch sizes (e.g. 128^3, C>=32) a whole sample
    # no longer fits VMEM (64 MiB on v7x, 128 MiB on v5e/v6e): tile the grid over
    # D with a 1-voxel halo, carry the InstanceNorm sums in scratch across the
    # reduction axis with pl.when init/finalize, size the tile from
    # pltpu.get_tpu_info().vmem_capacity_bytes, and raise vmem_limit_bytes.  When
    # N == 1, add the spatial-tile axis as a second "parallel" dimension so both
    # v7x TensorCores are busy.
    out_shape = (
        jax.ShapeDtypeStruct((N, C, S), jnp.float32),     # concat_2 (flat spatial)
        jax.ShapeDtypeStruct((N, C, Po), jnp.float32),    # pooled   (flat spatial)
    )
    in_specs = [
        pl.BlockSpec((1, C, S), lambda n: (n, 0, 0)),     # x (flat spatial)
        pl.BlockSpec((C, KT * C), lambda n: (0, 0)),      # conv weights, tap-major
        pl.BlockSpec((C, 1), lambda n: (0, 0)),           # InstanceNorm gamma
        pl.BlockSpec((C, 1), lambda n: (0, 0)),           # InstanceNorm beta
        pl.BlockSpec((1, S), lambda n: (0, 0)),           # per-lane d coordinate
        pl.BlockSpec((1, S), lambda n: (0, 0)),           # per-lane h coordinate
        pl.BlockSpec((1, S), lambda n: (0, 0)),           # per-lane w coordinate
        pl.BlockSpec((1, Po), lambda n: (0, 0)),          # flat src idx per pooled lane
    ]
    out_specs = (
        pl.BlockSpec((1, C, S), lambda n: (n, 0, 0)),
        pl.BlockSpec((1, C, Po), lambda n: (n, 0, 0)),    # Po<128 -> masked store,
    )                                                     # acceptable at toy size
    return pl.pallas_call(
        kernel,
        out_shape=out_shape,
        grid=(N,),                                        # one batch element per step
        in_specs=in_specs,
        out_specs=out_specs,
        scratch_shapes=[pltpu.VMEM((KT * C, S), jnp.float32)],   # im2col stack
        compiler_params=pltpu.CompilerParams(
            dimension_semantics=("parallel",),            # megacore over batch
            vmem_limit_bytes=32 * 1024 * 1024),
    )


# ----------------------------------------------------------------------------
# Wrapper
# ----------------------------------------------------------------------------
@functools.partial(jax.jit, static_argnums=(2,))
def _forward(x_ncdhw, params, kernel_size):
    N, C, D, H, W = x_ncdhw.shape
    KD, KH, KW = kernel_size
    S = D * H * W
    Do, Ho, Wo = D // 2, H // 2, W // 2
    Po = Do * Ho * Wo

    x = x_ncdhw.astype(jnp.float32)
    x_flat = x.reshape(N, C, S)                           # free NCDHW reshape

    # Conv weights (Cout, Cin, kd, kh, kw) -> (Cout, (kd, kh, kw, cin)) to match the
    # tap-major stacking order used inside the kernel.  Conv bias b1 intentionally
    # unused: InstanceNorm's mean subtraction cancels it exactly.
    w_mat = jnp.transpose(params['w1'].astype(jnp.float32),
                          (0, 2, 3, 4, 1)).reshape(C, KD * KH * KW * C)
    g = params['g1'].reshape(C, 1).astype(jnp.float32)
    be = params['be1'].reshape(C, 1).astype(jnp.float32)

    # Tiny i32 index vectors (constants): per-lane (d,h,w) coordinates of the flat
    # spatial axis, and the flat source index of every pooled output position.
    s_idx = np.arange(S)
    didx = jnp.asarray((s_idx // (H * W)).reshape(1, S), jnp.int32)
    hidx = jnp.asarray(((s_idx // W) % H).reshape(1, S), jnp.int32)
    widx = jnp.asarray((s_idx % W).reshape(1, S), jnp.int32)
    p_idx = np.arange(Po)
    s0 = (2 * (p_idx // (Ho * Wo)) * H * W
          + 2 * ((p_idx // Wo) % Ho) * W
          + 2 * (p_idx % Wo))
    s0 = jnp.asarray(s0.reshape(1, Po), jnp.int32)

    c2_flat, pooled_flat = _make_fused_call(N, C, D, H, W, KD, KH, KW)(
        x_flat, w_mat, g, be, didx, hidx, widx, s0)

    concat_2 = c2_flat.reshape(N, C, D, H, W)             # free reshapes back
    out = pooled_flat.reshape(N, C, Do, Ho, Wo)
    return out, concat_2


def dense_down_block_first(x_ncdhw, params, kernel_size=(3, 3, 3)):
    """Returns (MaxPool3d(2,2)(concat_2), concat_2) in NCDHW, matching the outputs
    of PyTorch DenseDownBlock_first.forward."""
    return _forward(x_ncdhw, params, tuple(kernel_size))


# ----------------------------------------------------------------------------
# Pure-JAX reference (NCDHW, mirrors the PyTorch forward) for validation
# ----------------------------------------------------------------------------
def reference_forward(x, params):
    def conv(x, w, b):
        y = jax.lax.conv_general_dilated(
            x, w, window_strides=(1, 1, 1),
            padding=[(1, 1), (1, 1), (1, 1)],
            dimension_numbers=('NCDHW', 'OIDHW', 'NCDHW'),
            precision=jax.lax.Precision.HIGHEST)
        return y + b[None, :, None, None, None]

    def inorm(x, g, be):
        mean = x.mean(axis=(2, 3, 4), keepdims=True)
        var = jnp.square(x - mean).mean(axis=(2, 3, 4), keepdims=True)
        xh = (x - mean) / jnp.sqrt(var + EPS)
        return xh * g[None, :, None, None, None] + be[None, :, None, None, None]

    def lrelu(x):
        return jnp.where(x >= 0, x, NEG_SLOPE * x)

    out_1 = lrelu(inorm(conv(x, params['w1'], params['b1']),
                        params['g1'], params['be1']))
    concat_1 = out_1 + x
    concat_2 = concat_1 + x
    pooled = jax.lax.reduce_window(concat_2, -jnp.inf, jax.lax.max,
                                   (1, 1, 2, 2, 2), (1, 1, 2, 2, 2), 'VALID')
    return pooled, concat_2


# ----------------------------------------------------------------------------
if __name__ == "__main__":
    key = jax.random.PRNGKey(0)
    ks = jax.random.split(key, 10)

    N, C, D, H, W = 2, 8, 8, 8, 8          # in_planes = 8, kernel_size = 3x3x3
    x = jax.random.normal(ks[0], (N, C, D, H, W), jnp.float32)

    params = {
        # conv1 / norm1 (the only parameters that affect the returned outputs)
        'w1': 0.1 * jax.random.normal(ks[1], (C, C, 3, 3, 3), jnp.float32),
        'b1': 0.1 * jax.random.normal(ks[2], (C,), jnp.float32),
        'g1': 1.0 + 0.1 * jax.random.normal(ks[3], (C,), jnp.float32),
        'be1': 0.1 * jax.random.normal(ks[4], (C,), jnp.float32),
        # conv2 / norm2 exist in the PyTorch module but their branch never feeds
        # the returned outputs (dead compute) -- kept only to mirror the module's
        # parameter set; unused by the Pallas path.
        'w2': 0.1 * jax.random.normal(ks[5], (C, C, 3, 3, 3), jnp.float32),
        'b2': 0.1 * jax.random.normal(ks[6], (C,), jnp.float32),
        'g2': 1.0 + 0.1 * jax.random.normal(ks[7], (C,), jnp.float32),
        'be2': 0.1 * jax.random.normal(ks[8], (C,), jnp.float32),
    }

    out, concat_2 = dense_down_block_first(x, params)
    jax.block_until_ready((out, concat_2))

    ref_out, ref_c2 = reference_forward(x, params)
    assert out.shape == (N, C, D // 2, H // 2, W // 2)
    assert concat_2.shape == (N, C, D, H, W)
    # Tolerance covers bf16 MXU operands (f32 accumulation) vs the f32
    # Precision.HIGHEST reference; max deviation estimated well under 2e-2.
    assert jnp.allclose(out, ref_out, atol=3e-2, rtol=2e-2)
    assert jnp.allclose(concat_2, ref_c2, atol=3e-2, rtol=2e-2)

    print("KERNEL_OK")
</pallas_src>

<mosaic_0001>
module attributes {stable_mosaic.version = 11 : i64} {
  func.func @kernel(%arg0: i32, %arg1: memref<1x8x512xf32, #tpu.memory_space<vmem>>, %arg2: memref<8x216xf32, #tpu.memory_space<vmem>>, %arg3: memref<8x1xf32, #tpu.memory_space<vmem>>, %arg4: memref<8x1xf32, #tpu.memory_space<vmem>>, %arg5: memref<1x512xi32, #tpu.memory_space<vmem>>, %arg6: memref<1x512xi32, #tpu.memory_space<vmem>>, %arg7: memref<1x512xi32, #tpu.memory_space<vmem>>, %arg8: memref<1x64xi32, #tpu.memory_space<vmem>>, %arg9: memref<1x8x512xf32, #tpu.memory_space<vmem>>, %arg10: memref<1x8x64xf32, #tpu.memory_space<vmem>>, %arg11: memref<216x512xf32, #tpu.memory_space<vmem>>) attributes {dimension_semantics = [#tpu.dimension_semantics<parallel>], iteration_bounds = array<i64: 2>, scalar_prefetch = 0 : i64, scratch_operands = 1 : i64, tpu.core_type = #tpu.core_type<tc>, window_params = [{transform_indices = @transform_0, window_bounds = array<i64: 1, 8, 512>}, {pipeline_mode = #tpu.pipeline_mode<synchronous>, transform_indices = @transform_1, window_bounds = array<i64: 8, 216>}, {pipeline_mode = #tpu.pipeline_mode<synchronous>, transform_indices = @transform_2, window_bounds = array<i64: 8, 1>}, {pipeline_mode = #tpu.pipeline_mode<synchronous>, transform_indices = @transform_3, window_bounds = array<i64: 8, 1>}, {pipeline_mode = #tpu.pipeline_mode<synchronous>, transform_indices = @transform_4, window_bounds = array<i64: 1, 512>}, {pipeline_mode = #tpu.pipeline_mode<synchronous>, transform_indices = @transform_5, window_bounds = array<i64: 1, 512>}, {pipeline_mode = #tpu.pipeline_mode<synchronous>, transform_indices = @transform_6, window_bounds = array<i64: 1, 512>}, {pipeline_mode = #tpu.pipeline_mode<synchronous>, transform_indices = @transform_7, window_bounds = array<i64: 1, 64>}, {transform_indices = @transform_8, window_bounds = array<i64: 1, 8, 512>}, {transform_indices = @transform_9, window_bounds = array<i64: 1, 8, 64>}]} {
    %c0 = arith.constant 0 : index
    %c0_0 = arith.constant 0 : index
    %c0_1 = arith.constant 0 : index
    %0 = vector.load %arg1[%c0, %c0_0, %c0_1] : memref<1x8x512xf32, #tpu.memory_space<vmem>>, vector<1x8x512xf32>
    %1 = vector.shape_cast %0 : vector<1x8x512xf32> to vector<8x512xf32>
    %c0_2 = arith.constant 0 : index
    %c0_3 = arith.constant 0 : index
    %2 = vector.load %arg5[%c0_2, %c0_3] : memref<1x512xi32, #tpu.memory_space<vmem>>, vector<1x512xi32>
    %c0_4 = arith.constant 0 : index
    %c0_5 = arith.constant 0 : index
    %3 = vector.load %arg6[%c0_4, %c0_5] : memref<1x512xi32, #tpu.memory_space<vmem>>, vector<1x512xi32>
    %c0_6 = arith.constant 0 : index
    %c0_7 = arith.constant 0 : index
    %4 = vector.load %arg7[%c0_6, %c0_7] : memref<1x512xi32, #tpu.memory_space<vmem>>, vector<1x512xi32>
    %c-1_i32 = arith.constant -1 : i32
    %5 = vector.broadcast %c-1_i32 : i32 to vector<1x512xi32>
    %6 = arith.addi %2, %5 : vector<1x512xi32>
    %c0_i32 = arith.constant 0 : i32
    %7 = vector.broadcast %c0_i32 : i32 to vector<1x512xi32>
    %8 = arith.cmpi sge, %6, %7 : vector<1x512xi32>
    %c-1_i32_8 = arith.constant -1 : i32
    %9 = vector.broadcast %c-1_i32_8 : i32 to vector<1x512xi32>
    %10 = arith.addi %2, %9 : vector<1x512xi32>
    %c8_i32 = arith.constant 8 : i32
    %11 = vector.broadcast %c8_i32 : i32 to vector<1x512xi32>
    %12 = arith.cmpi slt, %10, %11 : vector<1x512xi32>
    %13 = arith.andi %8, %12 : vector<1x512xi1>
    %c1_i32 = arith.constant 1 : i32
    %14 = vector.broadcast %c1_i32 : i32 to vector<1x512xi32>
    %15 = arith.addi %2, %14 : vector<1x512xi32>
    %c0_i32_9 = arith.constant 0 : i32
    %16 = vector.broadcast %c0_i32_9 : i32 to vector<1x512xi32>
    %17 = arith.cmpi sge, %15, %16 : vector<1x512xi32>
    %c1_i32_10 = arith.constant 1 : i32
    %18 = vector.broadcast %c1_i32_10 : i32 to vector<1x512xi32>
    %19 = arith.addi %2, %18 : vector<1x512xi32>
    %c8_i32_11 = arith.constant 8 : i32
    %20 = vector.broadcast %c8_i32_11 : i32 to vector<1x512xi32>
    %21 = arith.cmpi slt, %19, %20 : vector<1x512xi32>
    %22 = arith.andi %17, %21 : vector<1x512xi1>
    %c-1_i32_12 = arith.constant -1 : i32
    %23 = vector.broadcast %c-1_i32_12 : i32 to vector<1x512xi32>
    %24 = arith.addi %3, %23 : vector<1x512xi32>
    %c0_i32_13 = arith.constant 0 : i32
    %25 = vector.broadcast %c0_i32_13 : i32 to vector<1x512xi32>
    %26 = arith.cmpi sge, %24, %25 : vector<1x512xi32>
    %c-1_i32_14 = arith.constant -1 : i32
    %27 = vector.broadcast %c-1_i32_14 : i32 to vector<1x512xi32>
    %28 = arith.addi %3, %27 : vector<1x512xi32>
    %c8_i32_15 = arith.constant 8 : i32
    %29 = vector.broadcast %c8_i32_15 : i32 to vector<1x512xi32>
    %30 = arith.cmpi slt, %28, %29 : vector<1x512xi32>
    %31 = arith.andi %26, %30 : vector<1x512xi1>
    %c1_i32_16 = arith.constant 1 : i32
    %32 = vector.broadcast %c1_i32_16 : i32 to vector<1x512xi32>
    %33 = arith.addi %3, %32 : vector<1x512xi32>
    %c0_i32_17 = arith.constant 0 : i32
    %34 = vector.broadcast %c0_i32_17 : i32 to vector<1x512xi32>
    %35 = arith.cmpi sge, %33, %34 : vector<1x512xi32>
    %c1_i32_18 = arith.constant 1 : i32
    %36 = vector.broadcast %c1_i32_18 : i32 to vector<1x512xi32>
    %37 = arith.addi %3, %36 : vector<1x512xi32>
    %c8_i32_19 = arith.constant 8 : i32
    %38 = vector.broadcast %c8_i32_19 : i32 to vector<1x512xi32>
    %39 = arith.cmpi slt, %37, %38 : vector<1x512xi32>
    %40 = arith.andi %35, %39 : vector<1x512xi1>
    %c-1_i32_20 = arith.constant -1 : i32
    %41 = vector.broadcast %c-1_i32_20 : i32 to vector<1x512xi32>
    %42 = arith.addi %4, %41 : vector<1x512xi32>
    %c0_i32_21 = arith.constant 0 : i32
    %43 = vector.broadcast %c0_i32_21 : i32 to vector<1x512xi32>
    %44 = arith.cmpi sge, %42, %43 : vector<1x512xi32>
    %c-1_i32_22 = arith.constant -1 : i32
    %45 = vector.broadcast %c-1_i32_22 : i32 to vector<1x512xi32>
    %46 = arith.addi %4, %45 : vector<1x512xi32>
    %c8_i32_23 = arith.constant 8 : i32
    %47 = vector.broadcast %c8_i32_23 : i32 to vector<1x512xi32>
    %48 = arith.cmpi slt, %46, %47 : vector<1x512xi32>
    %49 = arith.andi %44, %48 : vector<1x512xi1>
    %c1_i32_24 = arith.constant 1 : i32
    %50 = vector.broadcast %c1_i32_24 : i32 to vector<1x512xi32>
    %51 = arith.addi %4, %50 : vector<1x512xi32>
    %c0_i32_25 = arith.constant 0 : i32
    %52 = vector.broadcast %c0_i32_25 : i32 to vector<1x512xi32>
    %53 = arith.cmpi sge, %51, %52 : vector<1x512xi32>
    %c1_i32_26 = arith.constant 1 : i32
    %54 = vector.broadcast %c1_i32_26 : i32 to vector<1x512xi32>
    %55 = arith.addi %4, %54 : vector<1x512xi32>
    %c8_i32_27 = arith.constant 8 : i32
    %56 = vector.broadcast %c8_i32_27 : i32 to vector<1x512xi32>
    %57 = arith.cmpi slt, %55, %56 : vector<1x512xi32>
    %58 = arith.andi %53, %57 : vector<1x512xi1>
    %c73_i32 = arith.constant 73 : i32
    %59 = tpu.dynamic_rotate %1 by %c73_i32 dim 1 : vector<8x512xf32>, i32 -> vector<8x512xf32>
    %60 = arith.andi %13, %31 : vector<1x512xi1>
    %61 = arith.andi %60, %49 : vector<1x512xi1>
    %cst = arith.constant 0.000000e+00 : f32
    %62 = vector.shape_cast %61 : vector<1x512xi1> to vector<1x512xi1>
    %63 = vector.broadcast %62 : vector<1x512xi1> to vector<8x512xi1>
    %64 = vector.broadcast %cst : f32 to vector<8x512xf32>
    %65 = arith.select %63, %59, %64 : vector<8x512xi1>, vector<8x512xf32>
    %c0_28 = arith.constant 0 : index
    %c0_29 = arith.constant 0 : index
    %66 = vector.load %arg11[%c0_28, %c0_29] : memref<216x512xf32, #tpu.memory_space<vmem>>, vector<8x512xf32>
    tpu.vector_store %arg11[%c0_28, %c0_29], %65 {strides = array<i32>} : memref<216x512xf32, #tpu.memory_space<vmem>>, vector<8x512xf32>,
    %c72_i32 = arith.constant 72 : i32
    %67 = tpu.dynamic_rotate %1 by %c72_i32 dim 1 : vector<8x512xf32>, i32 -> vector<8x512xf32>
    %68 = arith.andi %13, %31 : vector<1x512xi1>
    %cst_30 = arith.constant 0.000000e+00 : f32
    %69 = vector.shape_cast %68 : vector<1x512xi1> to vector<1x512xi1>
    %70 = vector.broadcast %69 : vector<1x512xi1> to vector<8x512xi1>
    %71 = vector.broadcast %cst_30 : f32 to vector<8x512xf32>
    %72 = arith.select %70, %67, %71 : vector<8x512xi1>, vector<8x512xf32>
    %c8 = arith.constant 8 : index
    %c0_31 = arith.constant 0 : index
    %73 = vector.load %arg11[%c8, %c0_31] : memref<216x512xf32, #tpu.memory_space<vmem>>, vector<8x512xf32>
    tpu.vector_store %arg11[%c8, %c0_31], %72 {strides = array<i32>} : memref<216x512xf32, #tpu.memory_space<vmem>>, vector<8x512xf32>,
    %c71_i32 = arith.constant 71 : i32
    %74 = tpu.dynamic_rotate %1 by %c71_i32 dim 1 : vector<8x512xf32>, i32 -> vector<8x512xf32>
    %75 = arith.andi %13, %31 : vector<1x512xi1>
    %76 = arith.andi %75, %58 : vector<1x512xi1>
    %cst_32 = arith.constant 0.000000e+00 : f32
    %77 = vector.shape_cast %76 : vector<1x512xi1> to vector<1x512xi1>
    %78 = vector.broadcast %77 : vector<1x512xi1> to vector<8x512xi1>
    %79 = vector.broadcast %cst_32 : f32 to vector<8x512xf32>
    %80 = arith.select %78, %74, %79 : vector<8x512xi1>, vector<8x512xf32>
    %c16 = arith.constant 16 : index
    %c0_33 = arith.constant 0 : index
    %81 = vector.load %arg11[%c16, %c0_33] : memref<216x512xf32, #tpu.memory_space<vmem>>, vector<8x512xf32>
    tpu.vector_store %arg11[%c16, %c0_33], %80 {strides = array<i32>} : memref<216x512xf32, #tpu.memory_space<vmem>>, vector<8x512xf32>,
    %c65_i32 = arith.constant 65 : i32
    %82 = tpu.dynamic_rotate %1 by %c65_i32 dim 1 : vector<8x512xf32>, i32 -> vector<8x512xf32>
    %83 = arith.andi %13, %49 : vector<1x512xi1>
    %cst_34 = arith.constant 0.000000e+00 : f32
    %84 = vector.shape_cast %83 : vector<1x512xi1> to vector<1x512xi1>
    %85 = vector.broadcast %84 : vector<1x512xi1> to vector<8x512xi1>
    %86 = vector.broadcast %cst_34 : f32 to vector<8x512xf32>
    %87 = arith.select %85, %82, %86 : vector<8x512xi1>, vector<8x512xf32>
    %c24 = arith.constant 24 : index
    %c0_35 = arith.constant 0 : index
    %88 = vector.load %arg11[%c24, %c0_35] : memref<216x512xf32, #tpu.memory_space<vmem>>, vector<8x512xf32>
    tpu.vector_store %arg11[%c24, %c0_35], %87 {strides = array<i32>} : memref<216x512xf32, #tpu.memory_space<vmem>>, vector<8x512xf32>,
    %c64_i32 = arith.constant 64 : i32
    %89 = tpu.dynamic_rotate %1 by %c64_i32 dim 1 : vector<8x512xf32>, i32 -> vector<8x512xf32>
    %cst_36 = arith.constant 0.000000e+00 : f32
    %90 = vector.shape_cast %13 : vector<1x512xi1> to vector<1x512xi1>
    %91 = vector.broadcast %90 : vector<1x512xi1> to vector<8x512xi1>
    %92 = vector.broadcast %cst_36 : f32 to vector<8x512xf32>
    %93 = arith.select %91, %89, %92 : vector<8x512xi1>, vector<8x512xf32>
    %c32 = arith.constant 32 : index
    %c0_37 = arith.constant 0 : index
    %94 = vector.load %arg11[%c32, %c0_37] : memref<216x512xf32, #tpu.memory_space<vmem>>, vector<8x512xf32>
    tpu.vector_store %arg11[%c32, %c0_37], %93 {strides = array<i32>} : memref<216x512xf32, #tpu.memory_space<vmem>>, vector<8x512xf32>,
    %c63_i32 = arith.constant 63 : i32
    %95 = tpu.dynamic_rotate %1 by %c63_i32 dim 1 : vector<8x512xf32>, i32 -> vector<8x512xf32>
    %96 = arith.andi %13, %58 : vector<1x512xi1>
    %cst_38 = arith.constant 0.000000e+00 : f32
    %97 = vector.shape_cast %96 : vector<1x512xi1> to vector<1x512xi1>
    %98 = vector.broadcast %97 : vector<1x512xi1> to vector<8x512xi1>
    %99 = vector.broadcast %cst_38 : f32 to vector<8x512xf32>
    %100 = arith.select %98, %95, %99 : vector<8x512xi1>, vector<8x512xf32>
    %c40 = arith.constant 40 : index
    %c0_39 = arith.constant 0 : index
    %101 = vector.load %arg11[%c40, %c0_39] : memref<216x512xf32, #tpu.memory_space<vmem>>, vector<8x512xf32>
    tpu.vector_store %arg11[%c40, %c0_39], %100 {strides = array<i32>} : memref<216x512xf32, #tpu.memory_space<vmem>>, vector<8x512xf32>,
    %c57_i32 = arith.constant 57 : i32
    %102 = tpu.dynamic_rotate %1 by %c57_i32 dim 1 : vector<8x512xf32>, i32 -> vector<8x512xf32>
    %103 = arith.andi %13, %40 : vector<1x512xi1>
    %104 = arith.andi %103, %49 : vector<1x512xi1>
    %cst_40 = arith.constant 0.000000e+00 : f32
    %105 = vector.shape_cast %104 : vector<1x512xi1> to vector<1x512xi1>
    %106 = vector.broadcast %105 : vector<1x512xi1> to vector<8x512xi1>
    %107 = vector.broadcast %cst_40 : f32 to vector<8x512xf32>
    %108 = arith.select %106, %102, %107 : vector<8x512xi1>, vector<8x512xf32>
    %c48 = arith.constant 48 : index
    %c0_41 = arith.constant 0 : index
    %109 = vector.load %arg11[%c48, %c0_41] : memref<216x512xf32, #tpu.memory_space<vmem>>, vector<8x512xf32>
    tpu.vector_store %arg11[%c48, %c0_41], %108 {strides = array<i32>} : memref<216x512xf32, #tpu.memory_space<vmem>>, vector<8x512xf32>,
    %c56_i32 = arith.constant 56 : i32
    %110 = tpu.dynamic_rotate %1 by %c56_i32 dim 1 : vector<8x512xf32>, i32 -> vector<8x512xf32>
    %111 = arith.andi %13, %40 : vector<1x512xi1>
    %cst_42 = arith.constant 0.000000e+00 : f32
    %112 = vector.shape_cast %111 : vector<1x512xi1> to vector<1x512xi1>
    %113 = vector.broadcast %112 : vector<1x512xi1> to vector<8x512xi1>
    %114 = vector.broadcast %cst_42 : f32 to vector<8x512xf32>
    %115 = arith.select %113, %110, %114 : vector<8x512xi1>, vector<8x512xf32>
    %c56 = arith.constant 56 : index
    %c0_43 = arith.constant 0 : index
    %116 = vector.load %arg11[%c56, %c0_43] : memref<216x512xf32, #tpu.memory_space<vmem>>, vector<8x512xf32>
    tpu.vector_store %arg11[%c56, %c0_43], %115 {strides = array<i32>} : memref<216x512xf32, #tpu.memory_space<vmem>>, vector<8x512xf32>,
    %c55_i32 = arith.constant 55 : i32
    %117 = tpu.dynamic_rotate %1 by %c55_i32 dim 1 : vector<8x512xf32>, i32 -> vector<8x512xf32>
    %118 = arith.andi %13, %40 : vector<1x512xi1>
    %119 = arith.andi %118, %58 : vector<1x512xi1>
    %cst_44 = arith.constant 0.000000e+00 : f32
    %120 = vector.shape_cast %119 : vector<1x512xi1> to vector<1x512xi1>
    %121 = vector.broadcast %120 : vector<1x512xi1> to vector<8x512xi1>
    %122 = vector.broadcast %cst_44 : f32 to vector<8x512xf32>
    %123 = arith.select %121, %117, %122 : vector<8x512xi1>, vector<8x512xf32>
    %c64 = arith.constant 64 : index
    %c0_45 = arith.constant 0 : index
    %124 = vector.load %arg11[%c64, %c0_45] : memref<216x512xf32, #tpu.memory_space<vmem>>, vector<8x512xf32>
    tpu.vector_store %arg11[%c64, %c0_45], %123 {strides = array<i32>} : memref<216x512xf32, #tpu.memory_space<vmem>>, vector<8x512xf32>,
    %c9_i32 = arith.constant 9 : i32
    %125 = tpu.dynamic_rotate %1 by %c9_i32 dim 1 : vector<8x512xf32>, i32 -> vector<8x512xf32>
    %126 = arith.andi %31, %49 : vector<1x512xi1>
    %cst_46 = arith.constant 0.000000e+00 : f32
    %127 = vector.shape_cast %126 : vector<1x512xi1> to vector<1x512xi1>
    %128 = vector.broadcast %127 : vector<1x512xi1> to vector<8x512xi1>
    %129 = vector.broadcast %cst_46 : f32 to vector<8x512xf32>
    %130 = arith.select %128, %125, %129 : vector<8x512xi1>, vector<8x512xf32>
    %c72 = arith.constant 72 : index
    %c0_47 = arith.constant 0 : index
    %131 = vector.load %arg11[%c72, %c0_47] : memref<216x512xf32, #tpu.memory_space<vmem>>, vector<8x512xf32>
    tpu.vector_store %arg11[%c72, %c0_47], %130 {strides = array<i32>} : memref<216x512xf32, #tpu.memory_space<vmem>>, vector<8x512xf32>,
    %c8_i32_48 = arith.constant 8 : i32
    %132 = tpu.dynamic_rotate %1 by %c8_i32_48 dim 1 : vector<8x512xf32>, i32 -> vector<8x512xf32>
    %cst_49 = arith.constant 0.000000e+00 : f32
    %133 = vector.shape_cast %31 : vector<1x512xi1> to vector<1x512xi1>
    %134 = vector.broadcast %133 : vector<1x512xi1> to vector<8x512xi1>
    %135 = vector.broadcast %cst_49 : f32 to vector<8x512xf32>
    %136 = arith.select %134, %132, %135 : vector<8x512xi1>, vector<8x512xf32>
    %c80 = arith.constant 80 : index
    %c0_50 = arith.constant 0 : index
    %137 = vector.load %arg11[%c80, %c0_50] : memref<216x512xf32, #tpu.memory_space<vmem>>, vector<8x512xf32>
    tpu.vector_store %arg11[%c80, %c0_50], %136 {strides = array<i32>} : memref<216x512xf32, #tpu.memory_space<vmem>>, vector<8x512xf32>,
    %c7_i32 = arith.constant 7 : i32
    %138 = tpu.dynamic_rotate %1 by %c7_i32 dim 1 : vector<8x512xf32>, i32 -> vector<8x512xf32>
    %139 = arith.andi %31, %58 : vector<1x512xi1>
    %cst_51 = arith.constant 0.000000e+00 : f32
    %140 = vector.shape_cast %139 : vector<1x512xi1> to vector<1x512xi1>
    %141 = vector.broadcast %140 : vector<1x512xi1> to vector<8x512xi1>
    %142 = vector.broadcast %cst_51 : f32 to vector<8x512xf32>
    %143 = arith.select %141, %138, %142 : vector<8x512xi1>, vector<8x512xf32>
    %c88 = arith.constant 88 : index
    %c0_52 = arith.constant 0 : index
    %144 = vector.load %arg11[%c88, %c0_52] : memref<216x512xf32, #tpu.memory_space<vmem>>, vector<8x512xf32>
    tpu.vector_store %arg11[%c88, %c0_52], %143 {strides = array<i32>} : memref<216x512xf32, #tpu.memory_space<vmem>>, vector<8x512xf32>,
    %c1_i32_53 = arith.constant 1 : i32
    %145 = tpu.dynamic_rotate %1 by %c1_i32_53 dim 1 : vector<8x512xf32>, i32 -> vector<8x512xf32>
    %cst_54 = arith.constant 0.000000e+00 : f32
    %146 = vector.shape_cast %49 : vector<1x512xi1> to vector<1x512xi1>
    %147 = vector.broadcast %146 : vector<1x512xi1> to vector<8x512xi1>
    %148 = vector.broadcast %cst_54 : f32 to vector<8x512xf32>
    %149 = arith.select %147, %145, %148 : vector<8x512xi1>, vector<8x512xf32>
    %c96 = arith.constant 96 : index
    %c0_55 = arith.constant 0 : index
    %150 = vector.load %arg11[%c96, %c0_55] : memref<216x512xf32, #tpu.memory_space<vmem>>, vector<8x512xf32>
    tpu.vector_store %arg11[%c96, %c0_55], %149 {strides = array<i32>} : memref<216x512xf32, #tpu.memory_space<vmem>>, vector<8x512xf32>,
    %c104 = arith.constant 104 : index
    %c0_56 = arith.constant 0 : index
    %151 = vector.load %arg11[%c104, %c0_56] : memref<216x512xf32, #tpu.memory_space<vmem>>, vector<8x512xf32>
    tpu.vector_store %arg11[%c104, %c0_56], %1 {strides = array<i32>} : memref<216x512xf32, #tpu.memory_space<vmem>>, vector<8x512xf32>,
    %c511_i32 = arith.constant 511 : i32
    %152 = tpu.dynamic_rotate %1 by %c511_i32 dim 1 : vector<8x512xf32>, i32 -> vector<8x512xf32>
    %cst_57 = arith.constant 0.000000e+00 : f32
    %153 = vector.shape_cast %58 : vector<1x512xi1> to vector<1x512xi1>
    %154 = vector.broadcast %153 : vector<1x512xi1> to vector<8x512xi1>
    %155 = vector.broadcast %cst_57 : f32 to vector<8x512xf32>
    %156 = arith.select %154, %152, %155 : vector<8x512xi1>, vector<8x512xf32>
    %c112 = arith.constant 112 : index
    %c0_58 = arith.constant 0 : index
    %157 = vector.load %arg11[%c112, %c0_58] : memref<216x512xf32, #tpu.memory_space<vmem>>, vector<8x512xf32>
    tpu.vector_store %arg11[%c112, %c0_58], %156 {strides = array<i32>} : memref<216x512xf32, #tpu.memory_space<vmem>>, vector<8x512xf32>,
    %c505_i32 = arith.constant 505 : i32
    %158 = tpu.dynamic_rotate %1 by %c505_i32 dim 1 : vector<8x512xf32>, i32 -> vector<8x512xf32>
    %159 = arith.andi %40, %49 : vector<1x512xi1>
    %cst_59 = arith.constant 0.000000e+00 : f32
    %160 = vector.shape_cast %159 : vector<1x512xi1> to vector<1x512xi1>
    %161 = vector.broadcast %160 : vector<1x512xi1> to vector<8x512xi1>
    %162 = vector.broadcast %cst_59 : f32 to vector<8x512xf32>
    %163 = arith.select %161, %158, %162 : vector<8x512xi1>, vector<8x512xf32>
    %c120 = arith.constant 120 : index
    %c0_60 = arith.constant 0 : index
    %164 = vector.load %arg11[%c120, %c0_60] : memref<216x512xf32, #tpu.memory_space<vmem>>, vector<8x512xf32>
    tpu.vector_store %arg11[%c120, %c0_60], %163 {strides = array<i32>} : memref<216x512xf32, #tpu.memory_space<vmem>>, vector<8x512xf32>,
    %c504_i32 = arith.constant 504 : i32
    %165 = tpu.dynamic_rotate %1 by %c504_i32 dim 1 : vector<8x512xf32>, i32 -> vector<8x512xf32>
    %cst_61 = arith.constant 0.000000e+00 : f32
    %166 = vector.shape_cast %40 : vector<1x512xi1> to vector<1x512xi1>
    %167 = vector.broadcast %166 : vector<1x512xi1> to vector<8x512xi1>
    %168 = vector.broadcast %cst_61 : f32 to vector<8x512xf32>
    %169 = arith.select %167, %165, %168 : vector<8x512xi1>, vector<8x512xf32>
    %c128 = arith.constant 128 : index
    %c0_62 = arith.constant 0 : index
    %170 = vector.load %arg11[%c128, %c0_62] : memref<216x512xf32, #tpu.memory_space<vmem>>, vector<8x512xf32>
    tpu.vector_store %arg11[%c128, %c0_62], %169 {strides = array<i32>} : memref<216x512xf32, #tpu.memory_space<vmem>>, vector<8x512xf32>,
    %c503_i32 = arith.constant 503 : i32
    %171 = tpu.dynamic_rotate %1 by %c503_i32 dim 1 : vector<8x512xf32>, i32 -> vector<8x512xf32>
    %172 = arith.andi %40, %58 : vector<1x512xi1>
    %cst_63 = arith.constant 0.000000e+00 : f32
    %173 = vector.shape_cast %172 : vector<1x512xi1> to vector<1x512xi1>
    %174 = vector.broadcast %173 : vector<1x512xi1> to vector<8x512xi1>
    %175 = vector.broadcast %cst_63 : f32 to vector<8x512xf32>
    %176 = arith.select %174, %171, %175 : vector<8x512xi1>, vector<8x512xf32>
    %c136 = arith.constant 136 : index
    %c0_64 = arith.constant 0 : index
    %177 = vector.load %arg11[%c136, %c0_64] : memref<216x512xf32, #tpu.memory_space<vmem>>, vector<8x512xf32>
    tpu.vector_store %arg11[%c136, %c0_64], %176 {strides = array<i32>} : memref<216x512xf32, #tpu.memory_space<vmem>>, vector<8x512xf32>,
    %c457_i32 = arith.constant 457 : i32
    %178 = tpu.dynamic_rotate %1 by %c457_i32 dim 1 : vector<8x512xf32>, i32 -> vector<8x512xf32>
    %179 = arith.andi %22, %31 : vector<1x512xi1>
    %180 = arith.andi %179, %49 : vector<1x512xi1>
    %cst_65 = arith.constant 0.000000e+00 : f32
    %181 = vector.shape_cast %180 : vector<1x512xi1> to vector<1x512xi1>
    %182 = vector.broadcast %181 : vector<1x512xi1> to vector<8x512xi1>
    %183 = vector.broadcast %cst_65 : f32 to vector<8x512xf32>
    %184 = arith.select %182, %178, %183 : vector<8x512xi1>, vector<8x512xf32>
    %c144 = arith.constant 144 : index
    %c0_66 = arith.constant 0 : index
    %185 = vector.load %arg11[%c144, %c0_66] : memref<216x512xf32, #tpu.memory_space<vmem>>, vector<8x512xf32>
    tpu.vector_store %arg11[%c144, %c0_66], %184 {strides = array<i32>} : memref<216x512xf32, #tpu.memory_space<vmem>>, vector<8x512xf32>,
    %c456_i32 = arith.constant 456 : i32
    %186 = tpu.dynamic_rotate %1 by %c456_i32 dim 1 : vector<8x512xf32>, i32 -> vector<8x512xf32>
    %187 = arith.andi %22, %31 : vector<1x512xi1>
    %cst_67 = arith.constant 0.000000e+00 : f32
    %188 = vector.shape_cast %187 : vector<1x512xi1> to vector<1x512xi1>
    %189 = vector.broadcast %188 : vector<1x512xi1> to vector<8x512xi1>
    %190 = vector.broadcast %cst_67 : f32 to vector<8x512xf32>
    %191 = arith.select %189, %186, %190 : vector<8x512xi1>, vector<8x512xf32>
    %c152 = arith.constant 152 : index
    %c0_68 = arith.constant 0 : index
    %192 = vector.load %arg11[%c152, %c0_68] : memref<216x512xf32, #tpu.memory_space<vmem>>, vector<8x512xf32>
    tpu.vector_store %arg11[%c152, %c0_68], %191 {strides = array<i32>} : memref<216x512xf32, #tpu.memory_space<vmem>>, vector<8x512xf32>,
    %c455_i32 = arith.constant 455 : i32
    %193 = tpu.dynamic_rotate %1 by %c455_i32 dim 1 : vector<8x512xf32>, i32 -> vector<8x512xf32>
    %194 = arith.andi %22, %31 : vector<1x512xi1>
    %195 = arith.andi %194, %58 : vector<1x512xi1>
    %cst_69 = arith.constant 0.000000e+00 : f32
    %196 = vector.shape_cast %195 : vector<1x512xi1> to vector<1x512xi1>
    %197 = vector.broadcast %196 : vector<1x512xi1> to vector<8x512xi1>
    %198 = vector.broadcast %cst_69 : f32 to vector<8x512xf32>
    %199 = arith.select %197, %193, %198 : vector<8x512xi1>, vector<8x512xf32>
    %c160 = arith.constant 160 : index
    %c0_70 = arith.constant 0 : index
    %200 = vector.load %arg11[%c160, %c0_70] : memref<216x512xf32, #tpu.memory_space<vmem>>, vector<8x512xf32>
    tpu.vector_store %arg11[%c160, %c0_70], %199 {strides = array<i32>} : memref<216x512xf32, #tpu.memory_space<vmem>>, vector<8x512xf32>,
    %c449_i32 = arith.constant 449 : i32
    %201 = tpu.dynamic_rotate %1 by %c449_i32 dim 1 : vector<8x512xf32>, i32 -> vector<8x512xf32>
    %202 = arith.andi %22, %49 : vector<1x512xi1>
    %cst_71 = arith.constant 0.000000e+00 : f32
    %203 = vector.shape_cast %202 : vector<1x512xi1> to vector<1x512xi1>
    %204 = vector.broadcast %203 : vector<1x512xi1> to vector<8x512xi1>
    %205 = vector.broadcast %cst_71 : f32 to vector<8x512xf32>
    %206 = arith.select %204, %201, %205 : vector<8x512xi1>, vector<8x512xf32>
    %c168 = arith.constant 168 : index
    %c0_72 = arith.constant 0 : index
    %207 = vector.load %arg11[%c168, %c0_72] : memref<216x512xf32, #tpu.memory_space<vmem>>, vector<8x512xf32>
    tpu.vector_store %arg11[%c168, %c0_72], %206 {strides = array<i32>} : memref<216x512xf32, #tpu.memory_space<vmem>>, vector<8x512xf32>,
    %c448_i32 = arith.constant 448 : i32
    %208 = tpu.dynamic_rotate %1 by %c448_i32 dim 1 : vector<8x512xf32>, i32 -> vector<8x512xf32>
    %cst_73 = arith.constant 0.000000e+00 : f32
    %209 = vector.shape_cast %22 : vector<1x512xi1> to vector<1x512xi1>
    %210 = vector.broadcast %209 : vector<1x512xi1> to vector<8x512xi1>
    %211 = vector.broadcast %cst_73 : f32 to vector<8x512xf32>
    %212 = arith.select %210, %208, %211 : vector<8x512xi1>, vector<8x512xf32>
    %c176 = arith.constant 176 : index
    %c0_74 = arith.constant 0 : index
    %213 = vector.load %arg11[%c176, %c0_74] : memref<216x512xf32, #tpu.memory_space<vmem>>, vector<8x512xf32>
    tpu.vector_store %arg11[%c176, %c0_74], %212 {strides = array<i32>} : memref<216x512xf32, #tpu.memory_space<vmem>>, vector<8x512xf32>,
    %c447_i32 = arith.constant 447 : i32
    %214 = tpu.dynamic_rotate %1 by %c447_i32 dim 1 : vector<8x512xf32>, i32 -> vector<8x512xf32>
    %215 = arith.andi %22, %58 : vector<1x512xi1>
    %cst_75 = arith.constant 0.000000e+00 : f32
    %216 = vector.shape_cast %215 : vector<1x512xi1> to vector<1x512xi1>
    %217 = vector.broadcast %216 : vector<1x512xi1> to vector<8x512xi1>
    %218 = vector.broadcast %cst_75 : f32 to vector<8x512xf32>
    %219 = arith.select %217, %214, %218 : vector<8x512xi1>, vector<8x512xf32>
    %c184 = arith.constant 184 : index
    %c0_76 = arith.constant 0 : index
    %220 = vector.load %arg11[%c184, %c0_76] : memref<216x512xf32, #tpu.memory_space<vmem>>, vector<8x512xf32>
    tpu.vector_store %arg11[%c184, %c0_76], %219 {strides = array<i32>} : memref<216x512xf32, #tpu.memory_space<vmem>>, vector<8x512xf32>,
    %c441_i32 = arith.constant 441 : i32
    %221 = tpu.dynamic_rotate %1 by %c441_i32 dim 1 : vector<8x512xf32>, i32 -> vector<8x512xf32>
    %222 = arith.andi %22, %40 : vector<1x512xi1>
    %223 = arith.andi %222, %49 : vector<1x512xi1>
    %cst_77 = arith.constant 0.000000e+00 : f32
    %224 = vector.shape_cast %223 : vector<1x512xi1> to vector<1x512xi1>
    %225 = vector.broadcast %224 : vector<1x512xi1> to vector<8x512xi1>
    %226 = vector.broadcast %cst_77 : f32 to vector<8x512xf32>
    %227 = arith.select %225, %221, %226 : vector<8x512xi1>, vector<8x512xf32>
    %c192 = arith.constant 192 : index
    %c0_78 = arith.constant 0 : index
    %228 = vector.load %arg11[%c192, %c0_78] : memref<216x512xf32, #tpu.memory_space<vmem>>, vector<8x512xf32>
    tpu.vector_store %arg11[%c192, %c0_78], %227 {strides = array<i32>} : memref<216x512xf32, #tpu.memory_space<vmem>>, vector<8x512xf32>,
    %c440_i32 = arith.constant 440 : i32
    %229 = tpu.dynamic_rotate %1 by %c440_i32 dim 1 : vector<8x512xf32>, i32 -> vector<8x512xf32>
    %230 = arith.andi %22, %40 : vector<1x512xi1>
    %cst_79 = arith.constant 0.000000e+00 : f32
    %231 = vector.shape_cast %230 : vector<1x512xi1> to vector<1x512xi1>
    %232 = vector.broadcast %231 : vector<1x512xi1> to vector<8x512xi1>
    %233 = vector.broadcast %cst_79 : f32 to vector<8x512xf32>
    %234 = arith.select %232, %229, %233 : vector<8x512xi1>, vector<8x512xf32>
    %c200 = arith.constant 200 : index
    %c0_80 = arith.constant 0 : index
    %235 = vector.load %arg11[%c200, %c0_80] : memref<216x512xf32, #tpu.memory_space<vmem>>, vector<8x512xf32>
    tpu.vector_store %arg11[%c200, %c0_80], %234 {strides = array<i32>} : memref<216x512xf32, #tpu.memory_space<vmem>>, vector<8x512xf32>,
    %c439_i32 = arith.constant 439 : i32
    %236 = tpu.dynamic_rotate %1 by %c439_i32 dim 1 : vector<8x512xf32>, i32 -> vector<8x512xf32>
    %237 = arith.andi %22, %40 : vector<1x512xi1>
    %238 = arith.andi %237, %58 : vector<1x512xi1>
    %cst_81 = arith.constant 0.000000e+00 : f32
    %239 = vector.shape_cast %238 : vector<1x512xi1> to vector<1x512xi1>
    %240 = vector.broadcast %239 : vector<1x512xi1> to vector<8x512xi1>
    %241 = vector.broadcast %cst_81 : f32 to vector<8x512xf32>
    %242 = arith.select %240, %236, %241 : vector<8x512xi1>, vector<8x512xf32>
    %c208 = arith.constant 208 : index
    %c0_82 = arith.constant 0 : index
    %243 = vector.load %arg11[%c208, %c0_82] : memref<216x512xf32, #tpu.memory_space<vmem>>, vector<8x512xf32>
    tpu.vector_store %arg11[%c208, %c0_82], %242 {strides = array<i32>} : memref<216x512xf32, #tpu.memory_space<vmem>>, vector<8x512xf32>,
    %c0_83 = arith.constant 0 : index
    %c0_84 = arith.constant 0 : index
    %244 = vector.load %arg2[%c0_83, %c0_84] : memref<8x216xf32, #tpu.memory_space<vmem>>, vector<8x216xf32>
    %245 = arith.truncf %244 : vector<8x216xf32> to vector<8x216xbf16>
    %c0_85 = arith.constant 0 : index
    %c0_86 = arith.constant 0 : index
    %246 = vector.load %arg11[%c0_85, %c0_86] : memref<216x512xf32, #tpu.memory_space<vmem>>, vector<216x512xf32>
    %247 = arith.truncf %246 : vector<216x512xf32> to vector<216x512xbf16>
    %cst_87 = arith.constant dense<0.000000e+00> : vector<8x512xf32>
    %248 = tpu.matmul %245, %247, %cst_87 {dimension_numbers = #tpu.dot_dimension_numbers<[1], [0], [0], [1], [0, 0, 1, 1], [], []>} : vector<8x216xbf16>, vector<216x512xbf16>, vector<8x512xf32> -> vector<8x512xf32>
    %cst_88 = arith.constant dense<0.000000e+00> : vector<8xf32>
    %249 = vector.multi_reduction <add>, %248, %cst_88 [1] : vector<8x512xf32> to vector<8xf32>
    %250 = vector.shape_cast %249 : vector<8xf32> to vector<8x1xf32>
    %cst_89 = arith.constant 0.001953125 : f32
    %251 = vector.broadcast %cst_89 : f32 to vector<8x1xf32>
    %252 = arith.mulf %250, %251 : vector<8x1xf32>
    %253 = vector.broadcast %252 : vector<8x1xf32> to vector<8x512xf32>
    %254 = arith.subf %248, %253 : vector<8x512xf32>
    %255 = arith.mulf %254, %254 : vector<8x512xf32>
    %cst_90 = arith.constant dense<0.000000e+00> : vector<8xf32>
    %256 = vector.multi_reduction <add>, %255, %cst_90 [1] : vector<8x512xf32> to vector<8xf32>
    %257 = vector.shape_cast %256 : vector<8xf32> to vector<8x1xf32>
    %cst_91 = arith.constant 0.001953125 : f32
    %258 = vector.broadcast %cst_91 : f32 to vector<8x1xf32>
    %259 = arith.mulf %257, %258 : vector<8x1xf32>
    %cst_92 = arith.constant 9.99999974E-6 : f32
    %260 = vector.broadcast %cst_92 : f32 to vector<8x1xf32>
    %261 = arith.addf %259, %260 : vector<8x1xf32>
    %262 = math.rsqrt %261 : vector<8x1xf32>
    %263 = vector.broadcast %262 : vector<8x1xf32> to vector<8x512xf32>
    %264 = arith.mulf %254, %263 : vector<8x512xf32>
    %c0_93 = arith.constant 0 : index
    %c0_94 = arith.constant 0 : index
    %265 = vector.load %arg3[%c0_93, %c0_94] : memref<8x1xf32, #tpu.memory_space<vmem>>, vector<8x1xf32>
    %266 = vector.broadcast %265 : vector<8x1xf32> to vector<8x512xf32>
    %267 = arith.mulf %264, %266 : vector<8x512xf32>
    %c0_95 = arith.constant 0 : index
    %c0_96 = arith.constant 0 : index
    %268 = vector.load %arg4[%c0_95, %c0_96] : memref<8x1xf32, #tpu.memory_space<vmem>>, vector<8x1xf32>
    %269 = vector.broadcast %268 : vector<8x1xf32> to vector<8x512xf32>
    %270 = arith.addf %267, %269 : vector<8x512xf32>
    %cst_97 = arith.constant 0.000000e+00 : f32
    %271 = vector.broadcast %cst_97 : f32 to vector<8x512xf32>
    %272 = arith.cmpf oge, %270, %271 : vector<8x512xf32>
    %cst_98 = arith.constant 0.00999999977 : f32
    %273 = vector.broadcast %cst_98 : f32 to vector<8x512xf32>
    %274 = arith.mulf %273, %270 : vector<8x512xf32>
    %275 = arith.select %272, %270, %274 : vector<8x512xi1>, vector<8x512xf32>
    %cst_99 = arith.constant 2.000000e+00 : f32
    %276 = vector.broadcast %cst_99 : f32 to vector<8x512xf32>
    %277 = arith.mulf %276, %1 : vector<8x512xf32>
    %278 = arith.addf %275, %277 : vector<8x512xf32>
    %c0_100 = arith.constant 0 : index
    %c0_101 = arith.constant 0 : index
    %c0_102 = arith.constant 0 : index
    %279 = vector.load %arg9[%c0_100, %c0_101, %c0_102] : memref<1x8x512xf32, #tpu.memory_space<vmem>>, vector<1x8x512xf32>
    %280 = vector.shape_cast %279 : vector<1x8x512xf32> to vector<8x512xf32>
    %281 = vector.shape_cast %278 : vector<8x512xf32> to vector<1x8x512xf32>
    tpu.vector_store %arg9[%c0_100, %c0_101, %c0_102], %281 {strides = array<i32>} : memref<1x8x512xf32, #tpu.memory_space<vmem>>, vector<1x8x512xf32>,
    %c511_i32_103 = arith.constant 511 : i32
    %282 = tpu.dynamic_rotate %278 by %c511_i32_103 dim 1 : vector<8x512xf32>, i32 -> vector<8x512xf32>
    %283 = arith.maximumf %278, %282 : vector<8x512xf32>
    %c504_i32_104 = arith.constant 504 : i32
    %284 = tpu.dynamic_rotate %278 by %c504_i32_104 dim 1 : vector<8x512xf32>, i32 -> vector<8x512xf32>
    %285 = arith.maximumf %283, %284 : vector<8x512xf32>
    %c503_i32_105 = arith.constant 503 : i32
    %286 = tpu.dynamic_rotate %278 by %c503_i32_105 dim 1 : vector<8x512xf32>, i32 -> vector<8x512xf32>
    %287 = arith.maximumf %285, %286 : vector<8x512xf32>
    %c448_i32_106 = arith.constant 448 : i32
    %288 = tpu.dynamic_rotate %278 by %c448_i32_106 dim 1 : vector<8x512xf32>, i32 -> vector<8x512xf32>
    %289 = arith.maximumf %287, %288 : vector<8x512xf32>
    %c447_i32_107 = arith.constant 447 : i32
    %290 = tpu.dynamic_rotate %278 by %c447_i32_107 dim 1 : vector<8x512xf32>, i32 -> vector<8x512xf32>
    %291 = arith.maximumf %289, %290 : vector<8x512xf32>
    %c440_i32_108 = arith.constant 440 : i32
    %292 = tpu.dynamic_rotate %278 by %c440_i32_108 dim 1 : vector<8x512xf32>, i32 -> vector<8x512xf32>
    %293 = arith.maximumf %291, %292 : vector<8x512xf32>
    %c439_i32_109 = arith.constant 439 : i32
    %294 = tpu.dynamic_rotate %278 by %c439_i32_109 dim 1 : vector<8x512xf32>, i32 -> vector<8x512xf32>
    %295 = arith.maximumf %293, %294 : vector<8x512xf32>
    %296 = tpu.iota {dimensions = array<i32: 0>} : vector<512x64xi32>
    %c0_110 = arith.constant 0 : index
    %c0_111 = arith.constant 0 : index
    %297 = vector.load %arg8[%c0_110, %c0_111] : memref<1x64xi32, #tpu.memory_space<vmem>>, vector<1x64xi32>
    %298 = vector.broadcast %297 : vector<1x64xi32> to vector<512x64xi32>
    %299 = arith.cmpi eq, %296, %298 : vector<512x64xi32>
    %300 = arith.extui %299 : vector<512x64xi1> to vector<512x64xi32>
    %301 = arith.sitofp %300 : vector<512x64xi32> to vector<512x64xf32>
    %cst_112 = arith.constant dense<0.000000e+00> : vector<8x64xf32>
    %302 = tpu.matmul %295, %301, %cst_112 {dimension_numbers = #tpu.dot_dimension_numbers<[1], [0], [0], [1], [0, 0, 1, 1], [], []>} : vector<8x512xf32>, vector<512x64xf32>, vector<8x64xf32> -> vector<8x64xf32>
    %c0_113 = arith.constant 0 : index
    %c0_114 = arith.constant 0 : index
    %c0_115 = arith.constant 0 : index
    %303 = vector.load %arg10[%c0_113, %c0_114, %c0_115] : memref<1x8x64xf32, #tpu.memory_space<vmem>>, vector<1x8x64xf32>
    %304 = vector.shape_cast %303 : vector<1x8x64xf32> to vector<8x64xf32>
    %305 = vector.shape_cast %302 : vector<8x64xf32> to vector<1x8x64xf32>
    tpu.vector_store %arg10[%c0_113, %c0_114, %c0_115], %305 {strides = array<i32>} : memref<1x8x64xf32, #tpu.memory_space<vmem>>, vector<1x8x64xf32>,
    return
  }
  func.func @transform_0(%arg0: i32) -> (i32, i32, i32) {
    %c0_i32 = arith.constant 0 : i32
    %c0_i32_0 = arith.constant 0 : i32
    %c0_i32_1 = arith.constant 0 : i32
    return %arg0, %c0_i32, %c0_i32_0 : i32, i32, i32
  }
  func.func @transform_1(%arg0: i32) -> (i32, i32) {
    %c0_i32 = arith.constant 0 : i32
    %c0_i32_0 = arith.constant 0 : i32
    %c0_i32_1 = arith.constant 0 : i32
    return %c0_i32, %c0_i32_0 : i32, i32
  }
  func.func @transform_2(%arg0: i32) -> (i32, i32) {
    %c0_i32 = arith.constant 0 : i32
    %c0_i32_0 = arith.constant 0 : i32
    %c0_i32_1 = arith.constant 0 : i32
    return %c0_i32, %c0_i32_0 : i32, i32
  }
  func.func @transform_3(%arg0: i32) -> (i32, i32) {
    %c0_i32 = arith.constant 0 : i32
    %c0_i32_0 = arith.constant 0 : i32
    %c0_i32_1 = arith.constant 0 : i32
    return %c0_i32, %c0_i32_0 : i32, i32
  }
  func.func @transform_4(%arg0: i32) -> (i32, i32) {
    %c0_i32 = arith.constant 0 : i32
    %c0_i32_0 = arith.constant 0 : i32
    %c0_i32_1 = arith.constant 0 : i32
    return %c0_i32, %c0_i32_0 : i32, i32
  }
  func.func @transform_5(%arg0: i32) -> (i32, i32) {
    %c0_i32 = arith.constant 0 : i32
    %c0_i32_0 = arith.constant 0 : i32
    %c0_i32_1 = arith.constant 0 : i32
    return %c0_i32, %c0_i32_0 : i32, i32
  }
  func.func @transform_6(%arg0: i32) -> (i32, i32) {
    %c0_i32 = arith.constant 0 : i32
    %c0_i32_0 = arith.constant 0 : i32
    %c0_i32_1 = arith.constant 0 : i32
    return %c0_i32, %c0_i32_0 : i32, i32
  }
  func.func @transform_7(%arg0: i32) -> (i32, i32) {
    %c0_i32 = arith.constant 0 : i32
    %c0_i32_0 = arith.constant 0 : i32
    %c0_i32_1 = arith.constant 0 : i32
    return %c0_i32, %c0_i32_0 : i32, i32
  }
  func.func @transform_8(%arg0: i32) -> (i32, i32, i32) {
    %c0_i32 = arith.constant 0 : i32
    %c0_i32_0 = arith.constant 0 : i32
    %c0_i32_1 = arith.constant 0 : i32
    return %arg0, %c0_i32, %c0_i32_0 : i32, i32, i32
  }
  func.func @transform_9(%arg0: i32) -> (i32, i32, i32) {
    %c0_i32 = arith.constant 0 : i32
    %c0_i32_0 = arith.constant 0 : i32
    %c0_i32_1 = arith.constant 0 : i32
    return %arg0, %c0_i32, %c0_i32_0 : i32, i32, i32
  }
}

</mosaic_0001>

<bundles_post_ra>
// kernel: _forward.1
= control target key start
LH: loop header
LB: loop body
LE: loop exit
PB: predicated region body
PF: predicated region fallthrough
CT: control target
= control target key end

     0   :  { %s3102_s30 = smov 0   ;;  %s5115_s0 = inlined_call_operand.vmem [shape: f32[2,8,512], index: 0, kind: input, shape index: {}]   ;;  %s5116_s1 = inlined_call_operand.vmem [shape: f32[8,216], index: 1, kind: input, shape index: {}]   ;;  %s5117_s2 = inlined_call_operand.vmem [shape: f32[8,1], index: 2, kind: input, shape index: {}]   ;;  %s5118_s3 = inlined_call_operand.vmem [shape: f32[8,1], index: 3, kind: input, shape index: {}]   ;;  %s5119_s4 = inlined_call_operand.vmem [shape: s32[1,512], index: 4, kind: input, shape index: {}]   ;;  %s5120_s5 = inlined_call_operand.vmem [shape: s32[1,512], index: 5, kind: input, shape index: {}]   ;;  %s5121_s6 = inlined_call_operand.vmem [shape: s32[1,512], index: 6, kind: input, shape index: {}]   ;;  %s5122_s7 = inlined_call_operand.vmem [shape: s32[1,64], index: 7, kind: input, shape index: {}]   ;;  %s5123_s8 = inlined_call_operand.vmem [shape: f32[2,8,512], index: 8, kind: output, shape index: {0}]   ;;  %s5124_s9 = inlined_call_operand.vmem [shape: f32[2,8,64], index: 9, kind: output, shape index: {1}]  }
   0x1 LB: > { %s2316_s10 = sadd.s32 4294967295, %s3030_s30   ;;  %p2320_p0 = scmp.ge.s32.totalorder %s3030_s30, 1  ;;  %s3030_s30 = sphi %s3102_s30, %s20_s30  }
   0x2   : > { %p290_p1 = scmp.lt.s32.totalorder %s3030_s30, 3 }
   0x4   : > { %p291_p2 = pnand %p2320_p0, %p290_p1 }
   0x6   : > { %294 = sbr.rel (%p291_p2) target bundleno = 1211 (0x4bb), region = 52 }
   0xd   : > { %p330_p3 = scmp.lt.s32.totalorder %s2316_s10, 1  ;;  %v5164_v0 = vmov 0   ;;  %s3033_s15 = smov 73   ;;  %v1378_v9 = vld [vmem:[%s5116_s1 + $0x8] sm:$0xff]  ;;  %vm1545_vm0 = vcmask 719872   ;;  %v5209_v18 = vmov 0  ;;  %v384_v20 = vlaneseq }
   0xe   : > { %2946 = vset.pattern.permute.xlu0 %v5164_v0  ;;  %2947 = vset.pattern.permute.xlu1 %v5164_v0  ;;  %s3034_s16 = smov 72   ;;  %s3035_s17 = smov 65   ;;  %v1380_v10 = vpack.c.bf16 %v1378_v9, %v1378_v9  ;;  %v349_v11 = vld [vmem:[%s5119_s4] sm:$0xf]  ;;  %v5211_v21 = vmov 0  ;;  %v5216_v24 = vmov 0 }
   0xf   : > { %s5695_s10 = smov (!%p330_p3, %s2316_s10), 1  ;;  %s3036_s18 = smov 71   ;;  %v350_v12 = vld [vmem:[%s5120_s5] sm:$0xf]  ;;  %v352_v14 = vadd.s32 4294967295, %v349_v11  ;;  %v3173_v23 = vshrl.u32 %v384_v20, 7 }
  0x10   : > { %s2461_s11 = sshll.u32 %s5695_s10, 5  ;;  %s3037_s19 = smov 63   ;;  %2327 = vmatprep.mubr.msk.bf16.mxu0 %vm1545_vm0, %v1380_v10  ;;  %2329 = vmatprep.mubr.msk.bf16.mxu1 %vm1545_vm0, %v1380_v10  ;;  %v351_v13 = vld [vmem:[%s5121_s6] sm:$0xf]  ;;  %v360_v15 = vadd.s32 4294967295, %v350_v12  ;;  %v3209_v33 = vand.u32 127, %v384_v20 }
  0x11   : > { %s3120_s14 = scalar_lea.vmem %s5115_s0, %s2461_s11  ;;  %s3038_s20 = smov 64   ;;  %v368_v16 = vadd.s32 4294967295, %v351_v13  ;;  %vm353_vm1 = vcmp.ge.s32.totalorder %v352_v14, 0  ;;  %vm354_vm2 = vcmp.lt.s32.totalorder %v352_v14, 8  ;;  %v372_v19 = vadd.s32 1, %v351_v13  ;;  %5215 = vst [vmem:[#allocation3_spill] sm:$0xff] %v3173_v23 }
  0x12   : > { %v347_v1 = vld [vmem:[%s3120_s14 + $0x10] sm:$0xff]  ;;  %v348_v2 = vld [vmem:[%s3120_s14 + $0x18] sm:$0xff]  ;;  %v345_v3 = vld [vmem:[%s3120_s14] sm:$0xff]  ;;  %s3039_s21 = smov 56   ;;  %s3040_s22 = smov 57   ;;  %vm361_vm3 = vcmp.ge.s32.totalorder %v360_v15, 0 }
  0x13   : > { %v2791_v4 = vpack.i.bf16 %v347_v1, %v348_v2  ;;  %v346_v5 = vld [vmem:[%s3120_s14 + $0x8] sm:$0xff]  ;;  %s3041_s23 = smov 9   ;;  %s3042_s24 = smov 55   ;;  %v2926_v8 = vpack.i.bf16 %v348_v2, %v345_v3  ;;  %vm362_vm4 = vcmp.lt.s32.totalorder %v360_v15, 8  ;;  %vm3153_vm5 = vmand %vm353_vm1, %vm354_vm2  ;;  %vm369_vm6 = vcmp.ge.s32.totalorder %v368_v16, 0 }
  0x14   : > { %v2781_v6 = vpack.i.bf16 %v346_v5, %v345_v3  ;;  %s3043_s25 = smov 7   ;;  %s3044_s26 = smov 8   ;;  %v2916_v7 = vpack.i.bf16 %v347_v1, %v346_v5  ;;  %vm370_vm7 = vcmp.lt.s32.totalorder %v368_v16, 8  ;;  %vm3157_vm8 = vmand %vm361_vm3, %vm362_vm4  ;;  %vm373_vm11 = vcmp.ge.s32.totalorder %v372_v19, 0 }
  0x15   : > { %2792 = vrot.lane.b32.xlu1 %v2791_v4, %s3033_s15  ;;  %s3045_s27 = smov 1   ;;  %s3046_s28 = smov 121   ;;  %v5210_v18 = vsel %vm3157_vm8, 4294967295, %v5209_v18  ;;  %vm3161_vm9 = vmand %vm369_vm6, %vm370_vm7  ;;  %vm374_vm12 = vcmp.lt.s32.totalorder %v372_v19, 8  ;;  %v3184_v25 = vsub.s32 1, %v3173_v23  ;;  %v3191_v28 = vsub.s32 3, %v3173_v23 }
  0x16   : > { %2782 = vrot.lane.b32.xlu0 %v2781_v6, %s3033_s15  ;;  %s3047_s29 = smov 127   ;;  %s3048_s12 = smov 119   ;;  %v5212_v21 = vsel %vm3161_vm9, 4294967295, %v5211_v21  ;;  %vm3169_vm10 = vmand %vm3153_vm5, %vm3157_vm8  ;;  %v3198_v29 = vsub.s32 0, %v3173_v23  ;;  %v3207_v32 = vsub.s32 2, %v3173_v23  ;;  %v364_v36 = vadd.s32 1, %v350_v12 }
  0x17   : > { %s3049_s13 = smov 120   ;;  %vm392_vm13 = vmand %vm3169_vm10, %vm3161_vm9  ;;  %v435_v27 = vsel %vm3169_vm10, 1, %v5164_v0  ;;  %v3219_v39 = vadd.s32 1, %v349_v11  ;;  %v3266_v54 = vsel %vm3153_vm5, 1, %v5164_v0  ;;  %v5232_v57 = vmov 0 }
  0x18   : > { %vm3179_vm14 = vmand %vm373_vm11, %vm374_vm12  ;;  %v393_v26 = vsel %vm392_vm13, 1, %v5164_v0  ;;  %v443_v31 = vrot.slane %v435_v27, %v3184_v25  ;;  %v451_v35 = vrot.slane %v435_v27, %v3191_v28  ;;  %v439_v41 = vrot.slane %v435_v27, %v3198_v29 }
  0x19   : > { %2797 = vrot.lane.b32.xlu1 %v2791_v4, %s3034_s16  ;;  %v5217_v24 = vsel %vm3179_vm14, 4294967295, %v5216_v24  ;;  %vm477_vm15 = vmand %vm3169_vm10, %vm3179_vm14  ;;  %v401_v30 = vrot.slane %v393_v26, %v3184_v25  ;;  %v409_v34 = vrot.slane %v393_v26, %v3191_v28  ;;  %v397_v40 = vrot.slane %v393_v26, %v3198_v29 }
  0x1a   : > { %2787 = vrot.lane.b32.xlu0 %v2781_v6, %s3034_s16  ;;  %vm520_vm0 = vmand %vm3153_vm5, %vm3161_vm9  ;;  %v3214_v37 = vsel %vm477_vm15, 1, %v5164_v0  ;;  %vm3227_vm2 = vcmp.eq.s32.totalorder %v443_v31, 1  ;;  %v405_v44 = vrot.slane %v393_v26, %v3207_v32  ;;  %v447_v45 = vrot.slane %v435_v27, %v3207_v32 }
  0x1b   : > { %v3217_v38 = vsel %vm520_vm0, 1, %v5164_v0  ;;  %vm3223_vm1 = vcmp.eq.s32.totalorder %v401_v30, 1  ;;  %vm605_vm3 = vmand %vm3153_vm5, %vm3179_vm14  ;;  %vm3239_vm7 = vcmp.eq.s32.totalorder %v409_v34, 1  ;;  %vm3243_vm10 = vcmp.eq.s32.totalorder %v451_v35, 1 }
  0x1c   : > { %v486_v48 = vrot.slane %v3214_v37, %v3184_v25  ;;  %v529_v49 = vrot.slane %v3217_v38, %v3184_v25  ;;  %v482_v50 = vrot.slane %v3214_v37, %v3198_v29  ;;  %v525_v51 = vrot.slane %v3217_v38, %v3198_v29 }
  0x1d   : > { %2807 = vrot.lane.b32.xlu1 %v2781_v6, %s3035_s17  ;;  %vm3255_vm13 = vcmp.eq.s32.totalorder %v397_v40, 1  ;;  %vm3259_vm15 = vcmp.eq.s32.totalorder %v439_v41, 1  ;;  %v3269_v55 = vsel %vm605_vm3, 1, %v5164_v0  ;;  %vm3271_vm0 = vcmp.eq.s32.totalorder %v405_v44, 1 }
  0x1e   : > { %2802 = vrot.lane.b32.xlu0 %v2781_v6, %s3036_s18  ;;  %vm3275_vm6 = vcmp.eq.s32.totalorder %v447_v45, 1  ;;  %v494_v58 = vrot.slane %v3214_v37, %v3191_v28  ;;  %v537_v59 = vrot.slane %v3217_v38, %v3191_v28  ;;  %vm3288_vm11 = vcmp.eq.s32.totalorder %v486_v48, 1 }
  0x1f   : > { %v5233_v57 = vsel %vm3275_vm6, 4294967295, %v5232_v57  ;;  %v5234_v61 = vmov 0  ;;  %vm3292_vm12 = vcmp.eq.s32.totalorder %v529_v49, 1  ;;  %v5236_v62 = vmov 0 }
  0x20   : > { %v5235_v61 = vsel %vm3288_vm11, 4294967295, %v5234_v61  ;;  %v5237_v62 = vsel %vm3292_vm12, 4294967295, %v5236_v62  ;;  %v490_v63 = vrot.slane %v3214_v37, %v3207_v32  ;;  %v533_v1 = vrot.slane %v3217_v38, %v3207_v32 }
  0x21   : > { %2817 = vrot.lane.b32.xlu1 %v2791_v4, %s3035_s17  ;;  %vm5238_vm14 = vcmp.lt.s32.totalorder %v364_v36, 8  ;;  %vm5239_vm6 = vcmp.ge.s32.totalorder %v364_v36, 0  ;;  %vm3307_vm11 = vcmp.eq.s32.totalorder %v482_v50, 1  ;;  %vm3311_vm12 = vcmp.eq.s32.totalorder %v525_v51, 1 }
  0x22   : > { %2812 = vrot.lane.b32.xlu0 %v2791_v4, %s3036_s18  ;;  %vm3302_vm3 = vmand %vm5239_vm6, %vm5238_vm14  ;;  %v5244_v5 = vmov 0  ;;  %v610_v9 = vrot.slane %v3269_v55, %v3198_v29  ;;  %v579_v10 = vrot.slane %v3266_v54, %v3191_v28  ;;  %v622_v11 = vrot.slane %v3269_v55, %v3191_v28 }
  0x23   : > { %v5245_v5 = vsel %vm3311_vm12, 4294967295, %v5244_v5  ;;  %vm5246_vm14 = vmand %vm3157_vm8, %vm3161_vm9  ;;  %vm3335_vm6 = vcmp.eq.s32.totalorder %v494_v58, 1  ;;  %v5247_v19 = vmov 0  ;;  %vm3339_vm4 = vcmp.eq.s32.totalorder %v537_v59, 1 }
  0x24   : > { %v3333_v12 = vsel %vm5246_vm14, 1, %v5164_v0  ;;  %v5248_v19 = vsel %vm3335_vm6, 4294967295, %v5247_v19  ;;  %v5249_v20 = vmov 0  ;;  %vm3347_vm12 = vmand %vm3153_vm5, %vm3302_vm3  ;;  %v5251_v22 = vmov 0 }
  0x25   : > { %2827 = vrot.lane.b32.xlu1 %v2781_v6, %s3037_s19  ;;  %v5250_v20 = vsel %vm3339_vm4, 4294967295, %v5249_v20  ;;  %v5252_v22 = vsel %vm3347_vm12, 4294967295, %v5251_v22  ;;  %v575_v27 = vrot.slane %v3266_v54, %v3207_v32  ;;  %v618_v30 = vrot.slane %v3269_v55, %v3207_v32 }
  0x26   : > { %2822 = vrot.lane.b32.xlu0 %v2781_v6, %s3038_s20  ;;  %v786_v17 = vrot.slane %v3333_v12, %v3184_v25  ;;  %v782_v36 = vrot.slane %v3333_v12, %v3198_v29  ;;  %vm5253_vm14 = vcmp.lt.s32.totalorder %v3209_v33, 73  ;;  %vm3371_vm4 = vcmp.eq.s32.totalorder %v490_v63, 1 }
  0x27   : > { %v5254_v41 = vmov 0  ;;  %vm3375_vm5 = vcmp.eq.s32.totalorder %v533_v1, 1  ;;  %v5256_v44 = vmov 0  ;;  %v3382_v45 = vsel %vm3347_vm12, 1, %v5164_v0  ;;  %vm5259_vm8 = vmmov %vm5253_vm14 }
  0x28   : > { %v5255_v41 = vsel %vm3371_vm4, 4294967295, %v5254_v41  ;;  %v5257_v44 = vsel %vm3375_vm5, 4294967295, %v5256_v44  ;;  %vm5258_vm6 = vcmp.lt.s32.totalorder %v3209_v33, 72  ;;  %vm5260_vm4 = vmmov %vm5259_vm8  ;;  %v5273_v47 = vmov 0 }
  0x29   : > { %2837 = vrot.lane.b32.xlu1 %v2791_v4, %s3037_s19  ;;  %vm5270_vm5 = vmand %vm3347_vm12, %vm3161_vm9  ;;  %v700_v43 = vrot.slane %v3382_v45, %v3184_v25  ;;  %v794_v42 = vrot.slane %v3333_v12, %v3191_v28  ;;  %v5287_v52 = vmov 0  ;;  %v5289_v53 = vmov 0 }
  0x2a   : > { %2832 = vrot.lane.b32.xlu0 %v2791_v4, %s3038_s20  ;;  %v696_v56 = vrot.slane %v3382_v45, %v3198_v29  ;;  %vm3538_vm9 = vcmp.eq.s32.totalorder %v618_v30, 1 }
  0x2d   : > { %2847 = vrot.lane.b32.xlu1 %v2781_v6, %s3039_s21 }
  0x2e   : > { %2842 = vrot.lane.b32.xlu0 %v2781_v6, %s3040_s22 }
  0x31   : > { %2857 = vrot.lane.b32.xlu1 %v2791_v4, %s3039_s21 }
  0x32   : > { %2852 = vrot.lane.b32.xlu0 %v2791_v4, %s3040_s22 }
  0x35   : > { %2867 = vrot.lane.b32.xlu1 %v2781_v6, %s3041_s23 }
  0x36   : > { %2862 = vrot.lane.b32.xlu0 %v2781_v6, %s3042_s24 }
  0x39   : > { %2877 = vrot.lane.b32.xlu1 %v2791_v4, %s3041_s23  ;;  %s339_s23 = scalar_lea.vmem %s5123_s8, %s2461_s11 }
  0x3a   : > { %2872 = vrot.lane.b32.xlu0 %v2791_v4, %s3042_s24 }
  0x3d   : > { %2887 = vrot.lane.b32.xlu1 %v2781_v6, %s3043_s25 }
  0x3e   : > { %2882 = vrot.lane.b32.xlu0 %v2781_v6, %s3044_s26 }
  0x41   : > { %2897 = vrot.lane.b32.xlu1 %v2791_v4, %s3043_s25 }
  0x42   : > { %2892 = vrot.lane.b32.xlu0 %v2791_v4, %s3044_s26 }
  0x45   : > { %2907 = vrot.lane.b32.xlu1 %v2791_v4, %s3045_s27 }
  0x46   : > { %2902 = vrot.lane.b32.xlu0 %v2781_v6, %s3045_s27  ;;  %v571_v6 = vrot.slane %v3266_v54, %v3184_v25 }
  0x49   : > { %2917 = vrot.lane.b32.xlu1 %v2916_v7, %s3046_s28 }
  0x4a   : > { %2912 = vrot.lane.b32.xlu0 %v2916_v7, %s3047_s29 }
  0x4d   : > { %2927 = vrot.lane.b32.xlu1 %v2926_v8, %s3046_s28 }
  0x4e   : > { %2922 = vrot.lane.b32.xlu0 %v2926_v8, %s3047_s29 }
  0x51   : > { %2937 = vrot.lane.b32.xlu1 %v2916_v7, %s3048_s12 }
  0x52   : > { %2932 = vrot.lane.b32.xlu0 %v2916_v7, %s3049_s13  ;;  %v614_v7 = vrot.slane %v3269_v55, %v3184_v25 }
  0x55   : > { %1065 = vrot.lane.b32.xlu1 %v345_v3, %s3048_s12 }
  0x56   : > { %2942 = vrot.lane.b32.xlu0 %v2926_v8, %s3049_s13  ;;  %v567_v8 = vrot.slane %v3266_v54, %v3198_v29 }
  0x58   : > { %vm3462_vm12 = vcmp.eq.s32.totalorder %v567_v8, 1 }
  0x5a   : > { %1071 = vrot.lane.b32.xlu0 %v348_v2, %s3048_s12  ;;  %v5240_v2 = vmov 0 }
  0x5b   : > { %v5241_v2 = vsel %vm3302_vm3, 4294967295, %v5240_v2  ;;  %vm5261_vm3 = vmmov %vm5258_vm6 }
  0x87   : > { %v2793_v60 = vpop.permute.xlu1 %2792 }
  0x88   : > { %v2783_v3 = vpop.permute.xlu0 %2782  ;;  %v2795_v13 = vunpack.i.h.bf16 %v2793_v60  ;;  %v2794_v14 = vunpack.i.l.bf16 %v2793_v60 }
  0x89   : > { %v2785_v15 = vunpack.i.h.bf16 %v2783_v3  ;;  %v2784_v16 = vunpack.i.l.bf16 %v2783_v3 }
  0x8a   : > { %v387_v40 = vsel %vm5253_vm14, %v2795_v13, %v2794_v14 }
  0x8b   : > { %v2798_v26 = vpop.permute.xlu1 %2797  ;;  %v389_v48 = vsel %vm5253_vm14, %v2784_v16, %v2785_v15  ;;  %v390_v50 = vsel %vm5259_vm8, %v2794_v14, %v2784_v16  ;;  %v388_v51 = vsel %vm5260_vm4, %v2785_v15, %v2795_v13  ;;  %vm5262_vm14 = vmmov %vm5261_vm3  ;;  %vm3418_vm8 = vcmp.eq.s32.totalorder %v571_v6, 1 }
  0x8c   : > { %v2800_v31 = vunpack.i.h.bf16 %v2798_v26  ;;  %v2799_v34 = vunpack.i.l.bf16 %v2798_v26  ;;  %v2788_v35 = vpop.permute.xlu0 %2787  ;;  %vm5263_vm4 = vmmov %vm5261_vm3  ;;  %v5265_v26 = vmov 0  ;;  %v3440_v6 = vsel %vm5270_vm5, 1, %v5164_v0 }
  0x8d   : > { %v2790_v37 = vunpack.i.h.bf16 %v2788_v35  ;;  %v2789_v38 = vunpack.i.l.bf16 %v2788_v35  ;;  %v5266_v26 = vsel %vm3418_vm8, 4294967295, %v5265_v26  ;;  %vm5277_vm5 = vnez %v5235_v61 }
  0x8e   : > { %v431_v49 = vsel %vm5258_vm6, %v2800_v31, %v2799_v34  ;;  %vm5269_vm6 = vmpackc.low %vm3243_vm10, %vm3239_vm7  ;;  %vm5275_vm7 = vcmp.lt.s32.totalorder %v3209_v33, 65  ;;  %v662_v55 = vrot.slane %v3440_v6, %v3207_v32 }
  0x8f   : > { %v2808_v58 = vpop.permute.xlu1 %2807  ;;  %v433_v59 = vsel %vm5261_vm3, %v2789_v38, %v2790_v37  ;;  %v3398_v60 = vpack.c.bf16 %v431_v49, %v387_v40  ;;  %v434_v63 = vsel %vm5262_vm14, %v2799_v34, %v2789_v38  ;;  %v432_v1 = vsel %vm5263_vm4, %v2790_v37, %v2800_v31  ;;  %vm5276_vm10 = vmpackc.low %vm3227_vm2, %vm3223_vm1 }
  0x90   : > { %v2810_v3 = vunpack.i.h.bf16 %v2808_v58  ;;  %v2809_v13 = vunpack.i.l.bf16 %v2808_v58  ;;  %v2803_v14 = vpop.permute.xlu0 %2802  ;;  %v3408_v15 = vpack.c.bf16 %v433_v59, %v389_v48  ;;  %v3410_v16 = vpack.c.bf16 %v434_v63, %v390_v50  ;;  %vm5284_vm2 = vmpackc.low %vm3259_vm15, %vm3255_vm13 }
  0x91   : > { %vm5264_vm3 = vnez %v5233_v57  ;;  %vm3422_vm4 = vcmp.eq.s32.totalorder %v614_v7, 1  ;;  %v5267_v31 = vmov 0  ;;  %v2805_v34 = vunpack.i.h.bf16 %v2803_v14  ;;  %2543 = vmatprep.subr.msk.bf16.mxu1 %vm5269_vm6, %v3398_v60 }
  0x92   : > { %v5268_v31 = vsel %vm3422_vm4, 4294967295, %v5267_v31  ;;  %v2804_v35 = vunpack.i.l.bf16 %v2803_v14  ;;  %v3432_v37 = vpack.c.bf16 %v432_v1, %v388_v51  ;;  %vm5271_vm14 = vcmp.lt.s32.totalorder %v3219_v39, 8  ;;  %2465 = vmatprep.subr.msk.bf16.mxu0 %vm5276_vm10, %v3408_v15 }
  0x93   : > { %vm5272_vm4 = vcmp.ge.s32.totalorder %v3219_v39, 0  ;;  %v518_v46 = vsel %vm5275_vm7, %v2809_v13, %v2810_v3  ;;  %vm5278_vm6 = vnez %v5237_v62  ;;  %v790_v38 = vrot.slane %v3333_v12, %v3207_v32  ;;  %2468 = vmatpush1.bf16.msk.msra.mxu0 %vm5284_vm2, %v3410_v16  ;;  %v2818_v8 = vpop.permute.xlu1 %2817 }
  0x94   : > { %vm3446_vm8 = vmand %vm5272_vm4, %vm5271_vm14  ;;  %vm3466_vm14 = vcmp.eq.s32.totalorder %v610_v9, 1  ;;  %vm5283_vm1 = vcmp.lt.s32.totalorder %v3209_v33, 71  ;;  %vm5286_vm7 = vnez %v5245_v5  ;;  %vm3504_vm13 = vcmp.eq.s32.totalorder %v622_v11, 1  ;;  %v2813_v49 = vpop.permute.xlu0 %2812 }
  0x95   : > { %v5274_v47 = vsel %vm3446_vm8, 4294967295, %v5273_v47  ;;  %v475_v40 = vsel %vm5283_vm1, %v2804_v35, %v2805_v34  ;;  %vm5285_vm4 = vmpackc.low %vm5264_vm3, %vm3271_vm0  ;;  %vm3497_vm1 = vcmp.eq.s32.totalorder %v579_v10, 1  ;;  %v5290_v53 = vsel %vm3504_vm13, 4294967295, %v5289_v53 }
  0x96   : > { %2546 = vmatpush1.bf16.msk.msra.mxu1 %vm5285_vm4, %v3432_v37  ;;  %v5288_v52 = vsel %vm3497_vm1, 4294967295, %v5287_v52  ;;  %v708_v57 = vrot.slane %v3382_v45, %v3191_v28  ;;  %v3512_v9 = vpack.c.bf16 %v518_v46, %v475_v40  ;;  %v2820_v48 = vunpack.i.h.bf16 %v2818_v8 }
  0x97   : > { %v2819_v10 = vunpack.i.l.bf16 %v2818_v8  ;;  %v658_v50 = vrot.slane %v3440_v6, %v3184_v25  ;;  %vm5291_vm15 = vnez %v5241_v2  ;;  %v5292_v11 = vmov 0  ;;  %v2828_v61 = vpop.permute.xlu1 %2827 }
  0x98   : > { %vm3520_vm0 = vmand %vm3446_vm8, %vm5291_vm15  ;;  %v2815_v51 = vunpack.i.h.bf16 %v2813_v49  ;;  %v2814_v58 = vunpack.i.l.bf16 %v2813_v49  ;;  %vm5294_vm3 = vnez %v5248_v19  ;;  %vm5295_vm2 = vnez %v5250_v20 }
  0x99   : > { %v5293_v11 = vsel %vm3520_vm0, 4294967295, %v5292_v11  ;;  %vm3531_vm10 = vcmp.eq.s32.totalorder %v575_v27, 1  ;;  %v5296_v59 = vmov 0  ;;  %v5298_v63 = vmov 0 }
  0x9a   : > { %v5297_v59 = vsel %vm3531_vm10, 4294967295, %v5296_v59  ;;  %v5299_v63 = vsel %vm3538_vm9, 4294967295, %v5298_v63  ;;  %v654_v1 = vrot.slane %v3440_v6, %v3198_v29  ;;  %v666_v14 = vrot.slane %v3440_v6, %v3191_v28  ;;  %vm5303_vm9 = vmpackc.low %vm5278_vm6, %vm5277_vm5 }
  0x9b   : > { %vm5300_vm4 = vcmp.lt.s32.totalorder %v3209_v33, 65  ;;  %2471 = vmatprep.subr.msk.bf16.mxu0 %vm5303_vm9, %v3512_v9  ;;  %vm5304_vm10 = vnez %v5217_v24  ;;  %vm5309_vm5 = vnez %v5255_v41  ;;  %vm5310_vm6 = vnez %v5257_v44 }
  0x9c   : > { %v516_v54 = vsel %vm5300_vm4, %v2820_v48, %v2819_v10  ;;  %vm5301_vm8 = vmmov %vm5300_vm4  ;;  %vm3588_vm13 = vcmp.eq.s32.totalorder %v700_v43, 1  ;;  %v5320_v5 = vmov 0  ;;  %v5365_v44 = vmov 0 }
  0x9d   : > { %v517_v27 = vsel %vm5301_vm8, %v2810_v3, %v2820_v48  ;;  %vm5302_vm15 = vmmov %vm5300_vm4  ;;  %vm5305_vm4 = vnez %v5252_v22  ;;  %vm5306_vm8 = vcmp.lt.s32.totalorder %v3209_v33, 71  ;;  %v2830_v48 = vunpack.i.h.bf16 %v2828_v61 }
  0x9e   : > { %v519_v46 = vsel %vm5302_vm15, %v2819_v10, %v2809_v13  ;;  %v473_v30 = vsel %vm5306_vm8, %v2815_v51, %v2814_v58  ;;  %vm5307_vm15 = vmmov %vm5306_vm8  ;;  %v704_v13 = vrot.slane %v3382_v45, %v3207_v32 }
  0x9f   : > { %v474_v3 = vsel %vm5307_vm15, %v2805_v34, %v2815_v51  ;;  %vm5308_vm1 = vmmov %vm5306_vm8  ;;  %v3580_v8 = vpack.c.bf16 %v516_v54, %v473_v30  ;;  %v2823_v34 = vpop.permute.xlu0 %2822 }
  0xa0   : > { %v476_v62 = vsel %vm5308_vm1, %v2814_v58, %v2804_v35  ;;  %v3578_v40 = vpack.c.bf16 %v517_v27, %v474_v3  ;;  %v2829_v35 = vunpack.i.l.bf16 %v2828_v61  ;;  %v2825_v10 = vunpack.i.h.bf16 %v2823_v34  ;;  %vm5313_vm9 = vmand %vm5305_vm4, %vm5304_vm10 }
  0xa1   : > { %v3576_v6 = vpack.c.bf16 %v519_v46, %v476_v62  ;;  %v2824_v49 = vunpack.i.l.bf16 %v2823_v34  ;;  %v3598_v51 = vsel %vm5313_vm9, 1, %v5164_v0  ;;  %vm5314_vm15 = vmpackc.low %vm5286_vm7, %vm3307_vm11  ;;  %vm3612_vm1 = vcmp.eq.s32.totalorder %v658_v50, 1 }
  0xa2   : > { %vm5315_vm8 = vmpackc.low %vm5295_vm2, %vm5294_vm3  ;;  %vm3616_vm4 = vcmp.eq.s32.totalorder %v654_v1, 1  ;;  %vm3620_vm9 = vcmp.eq.s32.totalorder %v696_v56, 1  ;;  %vm5323_vm7 = vcmp.lt.s32.totalorder %v3209_v33, 63  ;;  %vm5324_vm3 = vcmp.lt.s32.totalorder %v3209_v33, 64  ;;  %v2838_v56 = vpop.permute.xlu1 %2837 }
  0xa3   : > { %2474 = vmatpush1.bf16.msk.msra.mxu0 %vm5314_vm15, %v3576_v6  ;;  %2549 = vmatprep.subr.msk.bf16.mxu1 %vm5315_vm8, %v3580_v8  ;;  %v5321_v5 = vsel %vm3620_vm9, 4294967295, %v5320_v5  ;;  %vm5322_vm11 = vmand %vm3520_vm0, %vm5304_vm10  ;;  %v603_v19 = vsel %vm5323_vm7, %v2829_v35, %v2830_v48  ;;  %v561_v20 = vsel %vm5324_vm3, %v2824_v49, %v2825_v10  ;;  %vm5326_vm8 = vnez %v5266_v26  ;;  %v2833_v27 = vpop.permute.xlu0 %2832 }
  0xa4   : > { %v3630_v4 = vsel %vm5322_vm11, 1, %v5164_v0  ;;  %vm5325_vm2 = vmpackc.low %vm5310_vm6, %vm5309_vm5  ;;  %vm5327_vm15 = vnez %v5268_v31  ;;  %vm3646_vm0 = vcmp.eq.s32.totalorder %v666_v14, 1  ;;  %v5328_v50 = vmov 0 }
  0xa5   : > { %2552 = vmatpush1.bf16.msk.msra.mxu1 %vm5325_vm2, %v3578_v40  ;;  %v5329_v50 = vsel %vm3646_vm0, 4294967295, %v5328_v50  ;;  %vm3650_vm7 = vcmp.eq.s32.totalorder %v708_v57, 1  ;;  %v5330_v58 = vmov 0  ;;  %v3656_v41 = vpack.c.bf16 %v603_v19, %v561_v20  ;;  %vm5354_vm0 = vmpackc.low %vm3466_vm14, %vm3462_vm12 }
  0xa6   : > { %v5331_v58 = vsel %vm3650_vm7, 4294967295, %v5330_v58  ;;  %v2840_v1 = vunpack.i.h.bf16 %v2838_v56  ;;  %v2839_v54 = vunpack.i.l.bf16 %v2838_v56  ;;  %v743_v46 = vrot.slane %v3598_v51, %v3184_v25  ;;  %v2848_v26 = vpop.permute.xlu1 %2847 }
  0xa7   : > { %v2835_v30 = vunpack.i.h.bf16 %v2833_v27  ;;  %v2834_v14 = vunpack.i.l.bf16 %v2833_v27  ;;  %vm3664_vm6 = vcmp.eq.s32.totalorder %v662_v55, 1  ;;  %v5332_v57 = vmov 0 }
  0xa8   : > { %v5333_v57 = vsel %vm3664_vm6, 4294967295, %v5332_v57  ;;  %vm3668_vm3 = vcmp.eq.s32.totalorder %v704_v13, 1  ;;  %v5334_v3 = vmov 0  ;;  %v739_v62 = vrot.slane %v3598_v51, %v3198_v29 }
  0xa9   : > { %v5335_v3 = vsel %vm3668_vm3, 4294967295, %v5334_v3  ;;  %v751_v61 = vrot.slane %v3598_v51, %v3191_v28  ;;  %vm5336_vm2 = vcmp.lt.s32.totalorder %v3209_v33, 63  ;;  %vm5339_vm3 = vmpackc.low %vm5327_vm15, %vm5326_vm8  ;;  %vm5340_vm6 = vnez %v5288_v52 }
  0xaa   : > { %v601_v34 = vsel %vm5336_vm2, %v2840_v1, %v2839_v54  ;;  %vm5337_vm11 = vmmov %vm5336_vm2  ;;  %2477 = vmatprep.subr.msk.bf16.mxu0 %vm5339_vm3, %v3656_v41  ;;  %vm5341_vm7 = vnez %v5290_v53  ;;  %v747_v13 = vrot.slane %v3598_v51, %v3207_v32  ;;  %vm5345_vm8 = vnez %v5210_v18 }
  0xab   : > { %v602_v19 = vsel %vm5337_vm11, %v2830_v48, %v2840_v1  ;;  %vm5338_vm5 = vmmov %vm5336_vm2  ;;  %vm5342_vm11 = vcmp.lt.s32.totalorder %v3209_v33, 64  ;;  %v3703_v20 = vsel %vm5345_vm8, 1, %v5164_v0  ;;  %vm5347_vm3 = vnez %v5297_v59 }
  0xac   : > { %v604_v55 = vsel %vm5338_vm5, %v2839_v54, %v2829_v35  ;;  %v559_v48 = vsel %vm5342_vm11, %v2835_v30, %v2834_v14  ;;  %vm5343_vm5 = vmmov %vm5342_vm11  ;;  %v2843_v54 = vpop.permute.xlu0 %2842  ;;  %vm5348_vm11 = vnez %v5299_v63  ;;  %vm3721_vm9 = vcmp.eq.s32.totalorder %v743_v46, 1 }
  0xad   : > { %v560_v35 = vsel %vm5343_vm5, %v2825_v10, %v2835_v30  ;;  %vm5344_vm2 = vmmov %vm5343_vm5  ;;  %v3713_v1 = vpack.c.bf16 %v601_v34, %v559_v48  ;;  %v2850_v10 = vunpack.i.h.bf16 %v2848_v26  ;;  %vm3728_vm15 = vcmp.eq.s32.totalorder %v786_v17, 1 }
  0xae   : > { %v562_v31 = vsel %vm5344_vm2, %v2834_v14, %v2824_v49  ;;  %v3711_v56 = vpack.c.bf16 %v602_v19, %v560_v35  ;;  %v5351_v27 = vmov 0  ;;  %v2849_v30 = vunpack.i.l.bf16 %v2848_v26  ;;  %vm5355_vm2 = vmpackc.low %vm5341_vm7, %vm5340_vm6 }
  0xaf   : > { %v3709_v51 = vpack.c.bf16 %v604_v55, %v562_v31  ;;  %5346 = vst [vmem:[#allocation4_spill] sm:$0xff] %v3713_v1  ;;  %v5352_v27 = vsel %vm3728_vm15, 4294967295, %v5351_v27  ;;  %v2845_v14 = vunpack.i.h.bf16 %v2843_v54  ;;  %v2844_v34 = vunpack.i.l.bf16 %v2843_v54  ;;  %2555 = vmatprep.subr.msk.bf16.mxu1 %vm5355_vm2, %v3713_v1  ;;  %vm5356_vm15 = vmand %vm5345_vm8, %vm5304_vm10  ;;  %v2858_v55 = vpop.permute.xlu1 %2857 }
  0xb0   : > { %vm5353_vm5 = vnez %v5212_v21  ;;  %v828_v17 = vrot.slane %v3703_v20, %v3184_v25  ;;  %v3757_v7 = vsel %vm5356_vm15, 1, %v5164_v0  ;;  %v824_v39 = vrot.slane %v3703_v20, %v3198_v29  ;;  %v2853_v54 = vpop.permute.xlu0 %2852 }
  0xb1   : > { %v3735_v19 = vsel %vm5353_vm5, 1, %v5164_v0  ;;  %2480 = vmatpush1.bf16.msk.msra.mxu0 %vm5354_vm0, %v3709_v51  ;;  %vm5357_vm12 = vcmp.lt.s32.totalorder %v3209_v33, 56  ;;  %vm5358_vm14 = vcmp.lt.s32.totalorder %v3209_v33, 57  ;;  %vm5359_vm0 = vmpackc.low %vm5348_vm11, %vm5347_vm3  ;;  %vm3777_vm6 = vcmp.eq.s32.totalorder %v739_v62, 1 }
  0xb2   : > { %v690_v52 = vsel %vm5357_vm12, %v2849_v30, %v2850_v10  ;;  %v646_v46 = vsel %vm5358_vm14, %v2844_v34, %v2845_v14  ;;  %2558 = vmatpush1.bf16.msk.msra.mxu1 %vm5359_vm0, %v3711_v56  ;;  %vm3784_vm15 = vcmp.eq.s32.totalorder %v782_v36, 1  ;;  %v2860_v26 = vunpack.i.h.bf16 %v2858_v55  ;;  %vm5374_vm7 = vmmov %vm5357_vm12 }
  0xb3   : > { %v3792_v31 = vpack.c.bf16 %v690_v52, %v646_v46  ;;  %v2859_v62 = vunpack.i.l.bf16 %v2858_v55  ;;  %vm3794_vm3 = vcmp.eq.s32.totalorder %v751_v61, 1  ;;  %vm3801_vm11 = vcmp.eq.s32.totalorder %v794_v42, 1  ;;  %vm5375_vm12 = vmmov %vm5374_vm7  ;;  %v2868_v22 = vpop.permute.xlu1 %2867 }
  0xb4   : > { %v5366_v44 = vsel %vm3794_vm3, 4294967295, %v5365_v44  ;;  %v5367_v36 = vmov 0  ;;  %v2855_v63 = vunpack.i.h.bf16 %v2853_v54  ;;  %v2854_v52 = vunpack.i.l.bf16 %v2853_v54  ;;  %vm5376_vm8 = vmmov %vm5374_vm7 }
  0xb5   : > { %5364 = vst [vmem:[#allocation5_spill] sm:$0xff] %v3792_v31  ;;  %v5368_v36 = vsel %vm3801_vm11, 4294967295, %v5367_v36  ;;  %vm5369_vm2 = vnez %v5321_v5  ;;  %vm3811_vm14 = vcmp.eq.s32.totalorder %v747_v13, 1  ;;  %v5370_v61 = vmov 0 }
  0xb6   : > { %v5371_v61 = vsel %vm3811_vm14, 4294967295, %v5370_v61  ;;  %vm3818_vm0 = vcmp.eq.s32.totalorder %v790_v38, 1  ;;  %v5372_v42 = vmov 0  ;;  %v871_v46 = vrot.slane %v3757_v7, %v3184_v25 }
  0xb7   : > { %v5373_v42 = vsel %vm3818_vm0, 4294967295, %v5372_v42  ;;  %v867_v55 = vrot.slane %v3757_v7, %v3198_v29  ;;  %v688_v54 = vsel %vm5374_vm7, %v2860_v26, %v2859_v62  ;;  %v689_v13 = vsel %vm5375_vm12, %v2850_v10, %v2860_v26  ;;  %vm5377_vm0 = vmpackc.low %vm3588_vm13, %vm3612_vm1 }
  0xb8   : > { %v691_v59 = vsel %vm5376_vm8, %v2859_v62, %v2849_v30  ;;  %2483 = vmatprep.subr.msk.bf16.mxu0 %vm5377_vm0, %v3792_v31  ;;  %vm5378_vm14 = vnez %v5329_v50  ;;  %vm5379_vm11 = vnez %v5331_v58  ;;  %v879_v12 = vrot.slane %v3757_v7, %v3191_v28 }
  0xb9   : > { %vm5380_vm7 = vcmp.lt.s32.totalorder %v3209_v33, 57  ;;  %v875_v30 = vrot.slane %v3757_v7, %v3207_v32  ;;  %vm5383_vm13 = vnez %v5241_v2  ;;  %v2870_v0 = vunpack.i.h.bf16 %v2868_v22 }
  0xba   : > { %v644_v38 = vsel %vm5380_vm7, %v2855_v63, %v2854_v52  ;;  %vm5381_vm8 = vmmov %vm5380_vm7  ;;  %vm5387_vm0 = vnez %v5333_v57  ;;  %vm3867_vm3 = vcmp.eq.s32.totalorder %v828_v17, 1  ;;  %v2869_v7 = vunpack.i.l.bf16 %v2868_v22 }
  0xbb   : > { %v645_v10 = vsel %vm5381_vm8, %v2845_v14, %v2855_v63  ;;  %vm5382_vm12 = vmmov %vm5380_vm7  ;;  %v3860_v53 = vpack.c.bf16 %v688_v54, %v644_v38  ;;  %v2863_v14 = vpop.permute.xlu0 %2862  ;;  %vm5388_vm7 = vnez %v5335_v3  ;;  %v921_v17 = vrot.slane %v3735_v19, %v3191_v28  ;;  %v2878_v38 = vpop.permute.xlu1 %2877 }
  0xbc   : > { %v647_v45 = vsel %vm5382_vm12, %v2854_v52, %v2844_v34  ;;  %v3858_v62 = vpack.c.bf16 %v689_v13, %v645_v10  ;;  %v2864_v63 = vunpack.i.l.bf16 %v2863_v14  ;;  %v5391_v52 = vmov 0   ;;  %vm5392_vm12 = vmpackc.low %vm5369_vm2, %vm3616_vm4 }
  0xbd   : > { %v3856_v26 = vpack.c.bf16 %v691_v59, %v647_v45  ;;  %5386 = vst [vmem:[#allocation8_spill] sm:$0xff] %v3860_v53  ;;  %v2865_v59 = vunpack.i.h.bf16 %v2863_v14  ;;  %v3875_v54 = vsel %vm5304_vm10, 1, %v5391_v52  ;;  %vm5393_vm8 = vmpackc.low %vm5379_vm11, %vm5378_vm14  ;;  %v909_v13 = vrot.slane %v3735_v19, %v3198_v29 }
  0xbe   : > { %5385 = vst [vmem:[#allocation7_spill] sm:$0xff] %v3858_v62  ;;  %2561 = vmatprep.subr.msk.bf16.mxu1 %vm5393_vm8, %v3860_v53  ;;  %v917_v5 = vrot.slane %v3735_v19, %v3207_v32  ;;  %vm5394_vm4 = vmand %vm5383_vm13, %vm5353_vm5  ;;  %vm5395_vm11 = vcmp.lt.s32.totalorder %v3209_v33, 9  ;;  %vm5396_vm2 = vcmp.lt.s32.totalorder %v3209_v33, 55  ;;  %vm5398_vm8 = vnez %v5352_v27 }
  0xbf   : > { %5384 = vst [vmem:[#allocation6_spill] sm:$0xff] %v3856_v26  ;;  %2486 = vmatpush1.bf16.msk.msra.mxu0 %vm5392_vm12, %v3856_v26  ;;  %v3901_v43 = vsel %vm5394_vm4, 1, %v5391_v52  ;;  %v775_v50 = vsel %vm5395_vm11, %v2869_v7, %v2870_v0  ;;  %v3907_v58 = vsel %vm5396_vm2, %v2864_v63, %v2865_v59  ;;  %vm5397_vm14 = vmpackc.low %vm5388_vm7, %vm5387_vm0  ;;  %vm3919_vm4 = vcmp.eq.s32.totalorder %v871_v46, 1  ;;  %v2873_v23 = vpop.permute.xlu0 %2872 }
  0xc0   : > { %2564 = vmatpush1.bf16.msk.msra.mxu1 %vm5397_vm14, %v3858_v62  ;;  %vm3923_vm11 = vcmp.eq.s32.totalorder %v824_v39, 1  ;;  %v5401_v45 = vmov 0  ;;  %vm3927_vm2 = vcmp.eq.s32.totalorder %v867_v55, 1  ;;  %v5403_v3 = vmov 0 }
  0xc1   : > { %v5402_v45 = vsel %vm3923_vm11, 4294967295, %v5401_v45  ;;  %v5404_v3 = vsel %vm3927_vm2, 4294967295, %v5403_v3  ;;  %v2488_v57 = vpack.c.bf16 %v775_v50, %v3907_v58  ;;  %v2880_v22 = vunpack.i.h.bf16 %v2878_v38 }
  0xc2   : > { %v2879_v14 = vunpack.i.l.bf16 %v2878_v38  ;;  %v5405_v53 = vrot.slane %v3703_v20, %v3191_v28  ;;  %v5406_v46 = vmov 0  ;;  %vm3939_vm7 = vcmp.eq.s32.totalorder %v879_v12, 1 }
  0xc3   : > { %v5408_v39 = vmov 0  ;;  %v959_v55 = vrot.slane %v3875_v54, %v3184_v25  ;;  %v2875_v26 = vunpack.i.h.bf16 %v2873_v23  ;;  %v2874_v31 = vunpack.i.l.bf16 %v2873_v23 }
  0xc4   : > { %vm3935_vm0 = vcmp.eq.s32.totalorder %v5405_v53, 1  ;;  %v5409_v39 = vsel %vm3939_vm7, 4294967295, %v5408_v39  ;;  %v5410_v50 = vrot.slane %v3703_v20, %v3207_v32  ;;  %v5411_v38 = vmov 0 }
  0xc5   : > { %v5407_v46 = vsel %vm3935_vm0, 4294967295, %v5406_v46  ;;  %vm3952_vm1 = vcmp.eq.s32.totalorder %v875_v30, 1  ;;  %v5413_v53 = vmov 0  ;;  %v1002_v12 = vrot.slane %v3901_v43, %v3184_v25 }
  0xc6   : > { %vm3948_vm14 = vcmp.eq.s32.totalorder %v5410_v50, 1  ;;  %v5414_v53 = vsel %vm3952_vm1, 4294967295, %v5413_v53  ;;  %vm5415_vm7 = vcmp.lt.s32.totalorder %v3209_v33, 9  ;;  %vm5418_vm1 = vmpackc.low %vm5398_vm8, %vm3721_vm9  ;;  %v5419_v50 = vrot.slane %v3735_v19, %v3184_v25  ;;  %v2888_v19 = vpop.permute.xlu1 %2887 }
  0xc7   : > { %v5412_v38 = vsel %vm3948_vm14, 4294967295, %v5411_v38  ;;  %v773_v23 = vsel %vm5415_vm7, %v2880_v22, %v2879_v14  ;;  %vm5416_vm14 = vmmov %vm5415_vm7  ;;  %2489 = vmatprep.subr.msk.bf16.mxu0 %vm5418_vm1, %v2488_v57  ;;  %v5420_v1 = vmov 0  ;;  %vm5427_vm8 = vnez %v5366_v44 }
  0xc8   : > { %v774_v20 = vsel %vm5416_vm14, %v2870_v0, %v2880_v22  ;;  %vm5417_vm0 = vmmov %vm5415_vm7  ;;  %vm3982_vm7 = vcmp.eq.s32.totalorder %v5419_v50, 1  ;;  %v998_v0 = vrot.slane %v3901_v43, %v3198_v29  ;;  %vm5428_vm14 = vnez %v5368_v36 }
  0xc9   : > { %v776_v30 = vsel %vm5417_vm0, %v2879_v14, %v2869_v7  ;;  %v5421_v1 = vsel %vm3982_vm7, 4294967295, %v5420_v1  ;;  %vm5422_vm0 = vcmp.lt.s32.totalorder %v3209_v33, 55  ;;  %vm4004_vm7 = vcmp.eq.s32.totalorder %v921_v17, 1  ;;  %v2883_v14 = vpop.permute.xlu0 %2882 }
  0xca   : > { %v3990_v49 = vsel %vm5422_vm0, %v2875_v26, %v2874_v31  ;;  %vm5424_vm9 = vmmov %vm5422_vm0  ;;  %v5429_v57 = vmov 0  ;;  %v967_v22 = vrot.slane %v3875_v54, %v3191_v28  ;;  %vm4017_vm12 = vcmp.eq.s32.totalorder %v909_v13, 1  ;;  %v2898_v44 = vpop.permute.xlu1 %2897 }
  0xcb   : > { %5423 = vst [vmem:[#allocation9_spill] sm:$0xff] %v3990_v49  ;;  %v3994_v27 = vsel %vm5424_vm9, %v2865_v59, %v2875_v26  ;;  %vm5425_vm1 = vmmov %vm5422_vm0  ;;  %v5430_v57 = vsel %vm4004_vm7, 4294967295, %v5429_v57  ;;  %v2566_v59 = vpack.c.bf16 %v773_v23, %v3990_v49  ;;  %vm5431_vm0 = vnez %v5371_v61 }
  0xcc   : > { %v3998_v7 = vsel %vm5425_vm1, %v2874_v31, %v2864_v63  ;;  %vm5432_vm9 = vnez %v5373_v42  ;;  %v5433_v31 = vmov 0  ;;  %v4024_v63 = vsel %vm5383_vm13, 1, %v5391_v52  ;;  %vm5435_vm7 = vmand %vm5383_vm13, %vm5304_vm10 }
  0xcd   : > { %5426 = vst [vmem:[#allocation10_spill] sm:$0xff] %v3998_v7  ;;  %v2491_v26 = vpack.c.bf16 %v776_v30, %v3998_v7  ;;  %v5434_v31 = vsel %vm4017_vm12, 4294967295, %v5433_v31  ;;  %v4032_v17 = vsel %vm5435_vm7, 1, %v5391_v52  ;;  %v2569_v23 = vpack.c.bf16 %v774_v20, %v3994_v27  ;;  %vm5442_vm13 = vmpackc.low %vm3784_vm15, %vm3777_vm6 }
  0xce   : > { %v2890_v30 = vunpack.i.h.bf16 %v2888_v19  ;;  %v2889_v13 = vunpack.i.l.bf16 %v2888_v19  ;;  %v2885_v50 = vunpack.i.h.bf16 %v2883_v14  ;;  %vm4035_vm2 = vcmp.eq.s32.totalorder %v917_v5, 1  ;;  %vm5443_vm7 = vmpackc.low %vm5428_vm14, %vm5427_vm8 }
  0xcf   : > { %vm5438_vm1 = vnez %v5210_v18  ;;  %vm5439_vm12 = vnez %v5274_v47  ;;  %v2884_v7 = vunpack.i.l.bf16 %v2883_v14  ;;  %2492 = vmatpush1.bf16.msk.msra.mxu0 %vm5442_vm13, %v2491_v26  ;;  %2567 = vmatprep.subr.msk.bf16.mxu1 %vm5443_vm7, %v2566_v59  ;;  %v1010_v18 = vrot.slane %v3901_v43, %v3191_v28  ;;  %vm5445_vm6 = vmpackc.low %vm5432_vm9, %vm5431_vm0  ;;  %v2893_v59 = vpop.permute.xlu0 %2892 }
  0xd0   : > { %vm4043_vm11 = vmand %vm5439_vm12, %vm5438_vm1  ;;  %v963_v5 = vrot.slane %v3875_v54, %v3207_v32  ;;  %v1006_v20 = vrot.slane %v3901_v43, %v3207_v32  ;;  %vm5444_vm1 = vcmp.lt.s32.totalorder %v3209_v33, 7  ;;  %2570 = vmatpush1.bf16.msk.msra.mxu1 %vm5445_vm6, %v2569_v23  ;;  %vm4074_vm8 = vcmp.eq.s32.totalorder %v959_v55, 1 }
  0xd1   : > { %v860_v48 = vsel %vm5444_vm1, %v2889_v13, %v2890_v30  ;;  %v5446_v35 = vmov 0  ;;  %vm4078_vm14 = vcmp.eq.s32.totalorder %v1002_v12, 1  ;;  %v5448_v36 = vmov 0  ;;  %vm5451_vm6 = vmmov %vm5444_vm1 }
  0xd2   : > { %v5447_v35 = vsel %vm4074_vm8, 4294967295, %v5446_v35  ;;  %v5449_v36 = vsel %vm4078_vm14, 4294967295, %v5448_v36  ;;  %vm5450_vm0 = vcmp.lt.s32.totalorder %v3209_v33, 8  ;;  %v2900_v55 = vunpack.i.h.bf16 %v2898_v44 }
  0xd3   : > { %v818_v19 = vsel %vm5450_vm0, %v2884_v7, %v2885_v50  ;;  %v2899_v26 = vunpack.i.l.bf16 %v2898_v44  ;;  %v2895_v23 = vunpack.i.h.bf16 %v2893_v59  ;;  %v2894_v43 = vunpack.i.l.bf16 %v2893_v59  ;;  %vm5452_vm0 = vmmov %vm5444_vm1 }
  0xd4   : > { %v2494_v14 = vpack.c.bf16 %v860_v48, %v818_v19  ;;  %v859_v42 = vsel %vm5451_vm6, %v2890_v30, %v2900_v55  ;;  %vm5453_vm13 = vnez %v5402_v45  ;;  %vm5454_vm9 = vnez %v5404_v3 }
  0xd5   : > { %v858_v44 = vsel %vm5444_vm1, %v2900_v55, %v2899_v26  ;;  %v861_v12 = vsel %vm5452_vm0, %v2899_v26, %v2889_v13  ;;  %v4113_v48 = vsel %vm4043_vm11, 1, %v5391_v52  ;;  %vm5455_vm15 = vcmp.lt.s32.totalorder %v3209_v33, 8  ;;  %vm5458_vm0 = vmpackc.low %vm3919_vm4, %vm3867_vm3  ;;  %v2908_v13 = vpop.permute.xlu1 %2907 }
  0xd6   : > { %v816_v19 = vsel %vm5455_vm15, %v2895_v23, %v2894_v43  ;;  %vm5456_vm1 = vmmov %vm5455_vm15  ;;  %2495 = vmatprep.subr.msk.bf16.mxu0 %vm5458_vm0, %v2494_v14  ;;  %vm5459_vm7 = vnez %v5407_v46  ;;  %vm5460_vm12 = vnez %v5409_v39  ;;  %v5461_v55 = vrot.slane %v3875_v54, %v3198_v29  ;;  %v2903_v14 = vpop.permute.xlu0 %2902 }
  0xd7   : > { %v817_v59 = vsel %vm5456_vm1, %v2885_v50, %v2895_v23  ;;  %vm5457_vm6 = vmmov %vm5456_vm1  ;;  %v5462_v50 = vmov 0  ;;  %vm4137_vm1 = vcmp.eq.s32.totalorder %v998_v0, 1  ;;  %v2910_v54 = vunpack.i.h.bf16 %v2908_v13 }
  0xd8   : > { %v819_v30 = vsel %vm5457_vm6, %v2894_v43, %v2884_v7  ;;  %vm4133_vm15 = vcmp.eq.s32.totalorder %v5461_v55, 1  ;;  %v5464_v7 = vmov 0  ;;  %vm5466_vm3 = vmand %vm4043_vm11, %vm5353_vm5  ;;  %v2572_v43 = vpack.c.bf16 %v858_v44, %v816_v19 }
  0xd9   : > { %v5463_v50 = vsel %vm4133_vm15, 4294967295, %v5462_v50  ;;  %v5465_v7 = vsel %vm4137_vm1, 4294967295, %v5464_v7  ;;  %v4147_v34 = vsel %vm5466_vm3, 1, %v5391_v52  ;;  %v2497_v10 = vpack.c.bf16 %v861_v12, %v819_v30  ;;  %v2918_v19 = vpop.permute.xlu1 %2917  ;;  %v4222_v30 = vld [vmem:[%s3120_s14 + $0x18] sm:$0xff] }
  0xda   : > { %v2575_v26 = vpack.c.bf16 %v859_v42, %v817_v59  ;;  %vm5467_vm4 = vnez %v5412_v38  ;;  %vm5468_vm6 = vnez %v5414_v53  ;;  %vm4153_vm14 = vcmp.eq.s32.totalorder %v967_v22, 1  ;;  %5494 = vst [vmem:[#allocation11_spill] sm:$0xff] %v4222_v30 }
  0xdb   : > { %v5469_v0 = vmov 0  ;;  %vm4157_vm1 = vcmp.eq.s32.totalorder %v1010_v18, 1  ;;  %v5471_v23 = vmov 0  ;;  %v2909_v55 = vunpack.i.l.bf16 %v2908_v13  ;;  %v4226_v13 = vld [vmem:[%s3120_s14 + $0x10] sm:$0xff] }
  0xdc   : > { %v5470_v0 = vsel %vm4153_vm14, 4294967295, %v5469_v0  ;;  %v5472_v23 = vsel %vm4157_vm1, 4294967295, %v5471_v23  ;;  %v2905_v61 = vunpack.i.h.bf16 %v2903_v14  ;;  %v2904_v12 = vunpack.i.l.bf16 %v2903_v14  ;;  %vm5478_vm1 = vmpackc.low %vm5454_vm9, %vm5453_vm13  ;;  %5495 = vst [vmem:[#allocation12_spill] sm:$0xff] %v4226_v13 }
  0xdd   : > { %vm5184_vm3 = vmmov 1   ;;  %vm5473_vm15 = vnez %v5421_v1  ;;  %vm4168_vm0 = vcmp.eq.s32.totalorder %v963_v5, 1  ;;  %v5476_v22 = vmov 0  ;;  %2498 = vmatpush1.bf16.msk.msra.mxu0 %vm5478_vm1, %v2497_v10  ;;  %vm5490_vm1 = vmpackc.low %vm5468_vm6, %vm5467_vm4  ;;  %v4230_v10 = vld [vmem:[%s3120_s14 + $0x8] sm:$0xff] }
  0xde   : > { %vm4164_vm5 = vmpackc.low %vm5184_vm3, %vm5473_vm15  ;;  %v5477_v22 = vsel %vm4168_vm0, 4294967295, %v5476_v22  ;;  %v1095_v18 = vrot.slane %v4032_v17, %v3191_v28  ;;  %vm5480_vm3 = vnez %v5430_v57  ;;  %vm5481_vm0 = vmmov 1   ;;  %5496 = vst [vmem:[#allocation13_spill] sm:$0xff] %v4230_v10 }
  0xdf   : > { %vm5479_vm15 = vmpackc.low %vm5460_vm12, %vm5459_vm7  ;;  %vm4191_vm8 = vcmp.eq.s32.totalorder %v1006_v20, 1  ;;  %v1118_v45 = vrot.slane %v4147_v34, %v3184_v25  ;;  %v1147_v46 = vrot.slane %v4113_v48, %v3184_v25  ;;  %v1048_v39 = vrot.slane %v4024_v63, %v3207_v32 }
  0xe0   : > { %2573 = vmatprep.subr.msk.bf16.mxu1 %vm5479_vm15, %v2572_v43  ;;  %vm4187_vm14 = vmpackc.low %vm5481_vm0, %vm5480_vm3  ;;  %vm5486_vm12 = vcmp.lt.s32.totalorder %v3209_v33, 1  ;;  %vm5491_vm3 = vnez %v5434_v31  ;;  %v4234_v43 = vld [vmem:[%s3120_s14] sm:$0xff]  ;;  %v5500_v14 = vrot.slane %v4024_v63, %v3184_v25  ;;  %v5509_v42 = vmov 0 }
  0xe1   : > { %v901_v57 = vsel %vm5486_vm12, %v2910_v54, %v2909_v55  ;;  %vm5487_vm9 = vmmov %vm5486_vm12  ;;  %2576 = vmatpush1.bf16.msk.msra.mxu1 %vm5490_vm1, %v2575_v26  ;;  %5497 = vst [vmem:[#allocation14_spill] sm:$0xff] %v4234_v43  ;;  %v2913_v26 = vpop.permute.xlu0 %2912  ;;  %v5511_v1 = vrot.slane %v4032_v17, %v3198_v29  ;;  %vm5515_vm12 = vcmp.lt.s32.totalorder %v3209_v33, 127  ;;  %vm4298_vm6 = vcmp.eq.s32.totalorder %v1118_v45, 1 }
  0xe2   : > { %v902_v5 = vsel %vm5487_vm9, %v2905_v61, %v2910_v54  ;;  %vm5488_vm13 = vmmov %vm5487_vm9  ;;  %v2914_v49 = vunpack.i.l.bf16 %v2913_v26  ;;  %v1126_v2 = vrot.slane %v4147_v34, %v3191_v28 }
  0xe3   : > { %v903_v20 = vsel %vm5488_vm13, %v2904_v12, %v2905_v61  ;;  %vm5489_vm7 = vmmov %vm5487_vm9  ;;  %v2578_v61 = vpack.c.bf16 %v4222_v30, %v901_v57  ;;  %v2581_v53 = vpack.c.bf16 %v4226_v13, %v902_v5  ;;  %vm4249_vm9 = vcmp.eq.s32.totalorder %v5500_v14, 1 }
  0xe4   : > { %v904_v44 = vsel %vm5489_vm7, %v2909_v55, %v2904_v12  ;;  %vm4217_vm15 = vmpackc.low %vm5481_vm0, %vm5491_vm3  ;;  %v2500_v38 = vpack.c.bf16 %v4230_v10, %v903_v20  ;;  %v2920_v12 = vunpack.i.h.bf16 %v2918_v19  ;;  %v2919_v57 = vunpack.i.l.bf16 %v2918_v19 }
  0xe5   : > { %v2503_v31 = vpack.c.bf16 %v4234_v43, %v904_v44  ;;  %vm4240_vm4 = vmpackc.low %vm5481_vm0, %vm4035_vm2  ;;  %v2915_v5 = vunpack.i.h.bf16 %v2913_v26  ;;  %2579 = vmatprep.subr.msk.bf16.mxu1 %vm4187_vm14, %v2578_v61  ;;  %vm5503_vm0 = vnez %v5447_v35  ;;  %vm5504_vm13 = vnez %v5449_v36  ;;  %v2923_v54 = vpop.permute.xlu0 %2922 }
  0xe6   : > { %vm1168_vm2 = vmand %vm4043_vm11, %vm5304_vm10  ;;  %2501 = vmatprep.subr.msk.bf16.mxu0 %vm4164_vm5, %v2500_v38  ;;  %v5505_v20 = vrot.slane %v4032_v17, %v3184_v25  ;;  %v5508_v19 = vrot.slane %v4024_v63, %v3198_v29  ;;  %vm4282_vm5 = vcmp.eq.s32.totalorder %v5511_v1, 1  ;;  %v5512_v61 = vmov 0  ;;  %2582 = vmatpush1.bf16.msk.msra.mxu1 %vm4240_vm4, %v2581_v53 }
  0xe7   : > { %v5513_v61 = vsel %vm4282_vm5, 4294967295, %v5512_v61  ;;  %v1091_v38 = vrot.slane %v4032_v17, %v3207_v32  ;;  %v1114_v26 = vrot.slane %v4147_v34, %v3198_v29  ;;  %vm5514_vm14 = vcmp.lt.s32.totalorder %v3209_v33, 121  ;;  %2504 = vmatpush1.bf16.msk.msra.mxu0 %vm4217_vm15, %v2503_v31 }
  0xe8   : > { %vm4268_vm1 = vcmp.eq.s32.totalorder %v5505_v20, 1  ;;  %vm4275_vm3 = vcmp.eq.s32.totalorder %v5508_v19, 1  ;;  %v990_v14 = vsel %vm5514_vm14, %v2919_v57, %v2920_v12  ;;  %v948_v20 = vsel %vm5515_vm12, %v2914_v49, %v2915_v5  ;;  %v2928_v19 = vpop.permute.xlu1 %2927 }
  0xe9   : > { %v5510_v42 = vsel %vm4275_vm3, 4294967295, %v5509_v42  ;;  %v5516_v1 = vmov 0  ;;  %vm4302_vm7 = vcmp.eq.s32.totalorder %v1147_v46, 1  ;;  %v5518_v17 = vmov 0 }
  0xea   : > { %v5517_v1 = vsel %vm4298_vm6, 4294967295, %v5516_v1  ;;  %v5519_v17 = vsel %vm4302_vm7, 4294967295, %v5518_v17  ;;  %v1143_v43 = vrot.slane %v4113_v48, %v3198_v29  ;;  %vm5520_vm12 = vnez %v5212_v21 }
  0xeb   : > { %vm5521_vm14 = vnez %v5274_v47  ;;  %v2506_v59 = vpack.c.bf16 %v990_v14, %v948_v20  ;;  %v2930_v31 = vunpack.i.h.bf16 %v2928_v19  ;;  %v2929_v53 = vunpack.i.l.bf16 %v2928_v19 }
  0xec   : > { %v4318_v45 = vsel %vm1168_vm2, 1, %v5391_v52  ;;  %v2925_v46 = vunpack.i.h.bf16 %v2923_v54  ;;  %v2924_v30 = vunpack.i.l.bf16 %v2923_v54  ;;  %v5522_v13 = vrot.slane %v4024_v63, %v3191_v28 }
  0xed   : > { %v5523_v10 = vmov 0  ;;  %vm4327_vm15 = vcmp.eq.s32.totalorder %v1095_v18, 1  ;;  %v5525_v14 = vmov 0  ;;  %v1155_v20 = vrot.slane %v4113_v48, %v3191_v28 }
  0xee   : > { %vm4323_vm4 = vcmp.eq.s32.totalorder %v5522_v13, 1  ;;  %v5526_v14 = vsel %vm4327_vm15, 4294967295, %v5525_v14  ;;  %vm5527_vm11 = vcmp.lt.s32.totalorder %v3209_v33, 121  ;;  %vm5530_vm15 = vmpackc.low %vm5504_vm13, %vm5503_vm0  ;;  %vm5532_vm6 = vnez %v5465_v7 }
  0xef   : > { %v5524_v10 = vsel %vm4323_vm4, 4294967295, %v5523_v10  ;;  %v989_v19 = vsel %vm5527_vm11, %v2920_v12, %v2930_v31  ;;  %vm5528_vm2 = vmmov %vm5527_vm11  ;;  %2507 = vmatprep.subr.msk.bf16.mxu0 %vm5530_vm15, %v2506_v59  ;;  %vm5531_vm4 = vnez %v5463_v50  ;;  %vm4350_vm3 = vcmp.eq.s32.totalorder %v1048_v39, 1 }
  0xf0   : > { %v991_v63 = vsel %vm5528_vm2, %v2929_v53, %v2919_v57  ;;  %vm5529_vm7 = vmmov %vm5528_vm2  ;;  %vm4354_vm11 = vcmp.eq.s32.totalorder %v1091_v38, 1  ;;  %v5535_v12 = vmov 0  ;;  %vm5538_vm13 = vcmp.lt.s32.totalorder %v3209_v33, 127  ;;  %v2938_v38 = vpop.permute.xlu1 %2937 }
  0xf1   : > { %v992_v13 = vsel %vm5529_vm7, %v2930_v31, %v2929_v53  ;;  %v5536_v12 = vsel %vm4354_vm11, 4294967295, %v5535_v12  ;;  %vm5537_vm0 = vmand %vm5521_vm14, %vm5520_vm12  ;;  %v947_v36 = vsel %vm5538_vm13, %v2915_v5, %v2925_v46  ;;  %vm5541_vm2 = vnez %v5470_v0  ;;  %v2933_v5 = vpop.permute.xlu0 %2932 }
  0xf2   : > { %v4364_v35 = vsel %vm5537_vm0, 1, %v5391_v52  ;;  %vm5539_vm7 = vmmov %vm5538_vm13  ;;  %vm5542_vm5 = vnez %v5472_v23  ;;  %v1177_v59 = vrot.slane %v4318_v45, %v3184_v25  ;;  %v2587_v54 = vpack.c.bf16 %v989_v19, %v947_v36 }
  0xf3   : > { %v949_v39 = vsel %vm5539_vm7, %v2924_v30, %v2914_v49  ;;  %vm5540_vm15 = vmmov %vm5539_vm7  ;;  %v2940_v62 = vunpack.i.h.bf16 %v2938_v38  ;;  %vm5543_vm0 = vnez %v5477_v22  ;;  %v2935_v49 = vunpack.i.h.bf16 %v2933_v5 }
  0xf4   : > { %v950_v57 = vsel %vm5540_vm15, %v2925_v46, %v2924_v30  ;;  %vm2583_vm11 = vmpackc.low %vm5542_vm5, %vm5541_vm2  ;;  %v2509_v31 = vpack.c.bf16 %v991_v63, %v949_v39  ;;  %v2939_v30 = vunpack.i.l.bf16 %v2938_v38  ;;  %v2934_v46 = vunpack.i.l.bf16 %v2933_v5  ;;  %v1066_v19 = vpop.permute.xlu1 %1065 }
  0xf5   : > { %v2584_v53 = vpack.c.bf16 %v992_v13, %v950_v57  ;;  %vm2586_vm13 = vmpackc.low %vm4191_vm8, %vm5543_vm0  ;;  %vm4382_vm7 = vcmp.eq.s32.totalorder %v1114_v26, 1  ;;  %vm4391_vm15 = vcmp.eq.s32.totalorder %v1143_v43, 1  ;;  %vm4395_vm2 = vcmp.eq.s32.totalorder %v1126_v2, 1  ;;  %v2943_v63 = vpop.permute.xlu0 %2942 }
  0xf6   : > { %vm5546_vm5 = vmpackc.low %vm5532_vm6, %vm5531_vm4  ;;  %v1207_v3 = vrot.slane %v4364_v35, %v3184_v25  ;;  %v1122_v26 = vrot.slane %v4147_v34, %v3207_v32  ;;  %vm5551_vm6 = vcmp.lt.s32.totalorder %v3209_v33, 119  ;;  %vm5552_vm4 = vcmp.lt.s32.totalorder %v3209_v33, 120 }
  0xf7   : > { %2510 = vmatpush1.bf16.msk.msra.mxu0 %vm5546_vm5, %v2509_v31  ;;  %2585 = vmatprep.subr.msk.bf16.mxu1 %vm2583_vm11, %v2584_v53  ;;  %vm1257_vm8 = vmand %vm5521_vm14, %vm5304_vm10  ;;  %v1075_v50 = vsel %vm5551_vm6, %v2939_v30, %v2940_v62  ;;  %v1033_v7 = vsel %vm5552_vm4, %v2934_v46, %v2935_v49  ;;  %vm4415_vm0 = vcmp.eq.s32.totalorder %v1155_v20, 1  ;;  %v5553_v43 = vmov 0 }
  0xf8   : > { %2588 = vmatpush1.bf16.msk.msra.mxu1 %vm2586_vm13, %v2587_v54  ;;  %vm2511_vm11 = vmpackc.low %vm4268_vm1, %vm4249_vm9  ;;  %v5554_v43 = vsel %vm4415_vm0, 4294967295, %v5553_v43  ;;  %v1151_v34 = vrot.slane %v4113_v48, %v3207_v32  ;;  %v2512_v2 = vpack.c.bf16 %v1075_v50, %v1033_v7  ;;  %vm4421_vm5 = vcmp.eq.s32.totalorder %v1177_v59, 1 }
  0xf9   : > { %v5555_v13 = vmov 0  ;;  %v1173_v55 = vrot.slane %v4318_v45, %v3198_v29  ;;  %v4430_v44 = vsel %vm5521_vm14, 1, %v5391_v52  ;;  %v2945_v20 = vunpack.i.h.bf16 %v2943_v63 }
  0xfa   : > { %v5556_v13 = vsel %vm4421_vm5, 4294967295, %v5555_v13  ;;  %v2944_v36 = vunpack.i.l.bf16 %v2943_v63  ;;  %vm5557_vm9 = vnez %v5510_v42  ;;  %vm5558_vm1 = vnez %v5513_v61  ;;  %2513 = vmatprep.subr.msk.bf16.mxu0 %vm2511_vm11, %v2512_v2 }
  0xfb   : > { %v1203_v48 = vrot.slane %v4364_v35, %v3198_v29  ;;  %v4444_v39 = vsel %vm1257_vm8, 1, %v5391_v52  ;;  %vm5559_vm6 = vnez %v5517_v1  ;;  %vm5560_vm4 = vnez %v5519_v17 }
  0xfc   : > { %vm4450_vm0 = vcmp.eq.s32.totalorder %v1207_v3, 1  ;;  %v5561_v57 = vmov 0  ;;  %vm4454_vm13 = vcmp.eq.s32.totalorder %v1122_v26, 1  ;;  %v5563_v38 = vmov 0  ;;  %v1072_v3 = vpop.permute.xlu0 %1071 }
  0xfd   : > { %v5562_v57 = vsel %vm4450_vm0, 4294967295, %v5561_v57  ;;  %v5564_v38 = vsel %vm4454_vm13, 4294967295, %v5563_v38  ;;  %v1185_v24 = vrot.slane %v4318_v45, %v3191_v28  ;;  %v1215_v47 = vrot.slane %v4364_v35, %v3191_v28 }
  0xfe   : > { %vm5565_vm10 = vcmp.lt.s32.totalorder %v3209_v33, 119  ;;  %vm5566_vm14 = vcmp.lt.s32.totalorder %v3209_v33, 120  ;;  %vm4466_vm8 = vcmp.eq.s32.totalorder %v1151_v34, 1  ;;  %v5567_v53 = vmov 0 }
  0xff   : > { %v1076_v59 = vsel %vm5565_vm10, %v1066_v19, %v2939_v30  ;;  %v1034_v31 = vsel %vm5566_vm14, %v2944_v36, %v2934_v46  ;;  %v5568_v53 = vsel %vm4466_vm8, 4294967295, %v5567_v53  ;;  %v1236_v54 = vrot.slane %v4430_v44, %v3184_v25  ;;  %vm5572_vm5 = vmmov %vm5566_vm14 }
 0x100   : > { %vm5569_vm11 = vnez %v5293_v11  ;;  %v2515_v5 = vpack.c.bf16 %v1076_v59, %v1034_v31  ;;  %vm5571_vm10 = vnez %v5526_v14  ;;  %v1266_v30 = vrot.slane %v4444_v39, %v3184_v25  ;;  %v5656_v31 = vld [vmem:[#allocation4_spill] sm:$0xff] }
 0x101   : > { %v1181_v46 = vrot.slane %v4318_v45, %v3207_v32  ;;  %v1211_v26 = vrot.slane %v4364_v35, %v3207_v32  ;;  %v1032_v50 = vsel %vm5566_vm14, %v2935_v49, %v2945_v20  ;;  %v1035_v7 = vsel %vm5572_vm5, %v2945_v20, %v2944_v36  ;;  %vm5576_vm14 = vmpackc.low %vm5558_vm1, %vm5557_vm9 }
 0x102   : > { %vm5573_vm8 = vcmp.lt.s32.totalorder %v3209_v33, 119  ;;  %vm5575_vm13 = vnez %v5536_v12  ;;  %2516 = vmatpush1.bf16.msk.msra.mxu0 %vm5576_vm14, %v2515_v5  ;;  %v4518_v61 = vsel %vm5569_vm11, 1, %v5391_v52  ;;  %vm5578_vm9 = vmpackc.low %vm5560_vm4, %vm5559_vm6  ;;  %vm5579_vm1 = vnez %v5554_v43 }
 0x103   : > { %v1074_v34 = vsel %vm5573_vm8, %v2940_v62, %v1072_v3  ;;  %vm5574_vm0 = vmmov %vm5573_vm8  ;;  %2519 = vmatprep.subr.msk.bf16.mxu0 %vm5578_vm9, %v3432_v37  ;;  %vm4534_vm14 = vcmp.eq.s32.totalorder %v1203_v48, 1  ;;  %v1262_v42 = vrot.slane %v4444_v39, %v3198_v29  ;;  %vm5585_vm4 = vnez %v5524_v10 }
 0x104   : > { %v1077_v2 = vsel %vm5574_vm0, %v1072_v3, %v1066_v19  ;;  %v2593_v63 = vpack.c.bf16 %v1074_v34, %v1032_v50  ;;  %vm5577_vm0 = vmand %vm5569_vm11, %vm5520_vm12  ;;  %vm4530_vm12 = vcmp.eq.s32.totalorder %v1173_v55, 1  ;;  %vm5588_vm9 = vnez %v5562_v57  ;;  %v5658_v3 = vld [vmem:[#allocation5_spill] sm:$0xff] }
 0x105   : > { %v2590_v45 = vpack.c.bf16 %v1077_v2, %v1035_v7  ;;  %v4513_v62 = vsel %vm5577_vm0, 1, %v5391_v52  ;;  %v1232_v52 = vrot.slane %v4430_v44, %v3198_v29  ;;  %vm5584_vm6 = vmmov %vm5571_vm10  ;;  %vm5587_vm0 = vnez %v5556_v13  ;;  %v5660_v7 = vld [vmem:[#allocation8_spill] sm:$0xff] }
 0x106   : > { %vm5586_vm11 = vmpackc.low %vm5584_vm6, %vm5585_vm4  ;;  %vm4551_vm5 = vcmp.eq.s32.totalorder %v1185_v24, 1  ;;  %v5589_v37 = vmov 0  ;;  %vm4555_vm10 = vcmp.eq.s32.totalorder %v1215_v47, 1  ;;  %v5591_v1 = vmov 0 }
 0x107   : > { %2591 = vmatprep.subr.msk.bf16.mxu1 %vm5586_vm11, %v2590_v45  ;;  %v5590_v37 = vsel %vm4551_vm5, 4294967295, %v5589_v37  ;;  %v5592_v1 = vsel %vm4555_vm10, 4294967295, %v5591_v1  ;;  %v1244_v17 = vrot.slane %v4430_v44, %v3191_v28  ;;  %v1274_v10 = vrot.slane %v4444_v39, %v3191_v28  ;;  %vm5593_vm6 = vmpackc.low %vm5575_vm13, %vm4350_vm3 }
 0x108   : > { %2594 = vmatpush1.bf16.msk.msra.mxu1 %vm5593_vm6, %v2593_v63  ;;  %vm5595_vm11 = vnez %v5568_v53  ;;  %vm4572_vm5 = vcmp.eq.s32.totalorder %v1236_v54, 1  ;;  %v5596_v14 = vmov 0  ;;  %vm4576_vm10 = vcmp.eq.s32.totalorder %v1266_v30, 1  ;;  %vm5600_vm3 = vmpackc.low %vm4391_vm15, %vm4382_vm7  ;;  %v5659_v30 = vld [vmem:[#allocation6_spill] sm:$0xff] }
 0x109   : > { %v5597_v14 = vsel %vm4572_vm5, 4294967295, %v5596_v14  ;;  %v1297_v12 = vrot.slane %v4513_v62, %v3184_v25  ;;  %v1326_v18 = vrot.slane %v4518_v61, %v3184_v25  ;;  %2522 = vmatpush1.bf16.msk.msra.mxu0 %vm5600_vm3, %v3408_v15  ;;  %vm5601_vm13 = vmpackc.low %vm5579_vm1, %vm4395_vm2  ;;  %vm4600_vm8 = vcmp.eq.s32.totalorder %v1181_v46, 1  ;;  %v1377_v46 = vld [vmem:[%s5116_s1] sm:$0xff] }
 0x10a   : > { %2597 = vmatprep.subr.msk.bf16.mxu1 %vm5601_vm13, %v3410_v16  ;;  %vm4604_vm4 = vcmp.eq.s32.totalorder %v1211_v26, 1  ;;  %v1240_v15 = vrot.slane %v4430_v44, %v3207_v32  ;;  %v1270_v23 = vrot.slane %v4444_v39, %v3207_v32  ;;  %vm5606_vm7 = vmpackc.low %vm5588_vm9, %vm5587_vm0  ;;  %vm5607_vm15 = vnez %v5590_v37 }
 0x10b   : > { %2525 = vmatprep.subr.msk.bf16.mxu0 %vm5606_vm7, %v3578_v40  ;;  %vm5608_vm2 = vnez %v5592_v1  ;;  %vm4622_vm3 = vcmp.eq.s32.totalorder %v1232_v52, 1  ;;  %vm4626_vm13 = vcmp.eq.s32.totalorder %v1262_v42, 1  ;;  %v1293_v43 = vrot.slane %v4513_v62, %v3198_v29 }
 0x10c   : > { %v1322_v19 = vrot.slane %v4518_v61, %v3198_v29  ;;  %vm4638_vm9 = vcmp.eq.s32.totalorder %v1244_v17, 1  ;;  %v5613_v40 = vmov 0  ;;  %vm4642_vm7 = vcmp.eq.s32.totalorder %v1274_v10, 1 }
 0x10d   : > { %v5614_v40 = vsel %vm4638_vm9, 4294967295, %v5613_v40  ;;  %v5615_v13 = vmov 0  ;;  %v1305_v55 = vrot.slane %v4513_v62, %v3191_v28  ;;  %v1334_v44 = vrot.slane %v4518_v61, %v3191_v28 }
 0x10e   : > { %v5616_v13 = vsel %vm4642_vm7, 4294967295, %v5615_v13  ;;  %v1364_v20 = vrot.slane %v3630_v4, %v3191_v28  ;;  %v5617_v36 = vrot.slane %v3630_v4, %v3184_v25  ;;  %v5618_v48 = vmov 0 }
 0x10f   : > { %vm5620_vm1 = vnez %v5564_v38  ;;  %vm4669_vm9 = vcmp.eq.s32.totalorder %v1297_v12, 1  ;;  %vm4673_vm5 = vcmp.eq.s32.totalorder %v1326_v18, 1  ;;  %vm4693_vm7 = vcmp.eq.s32.totalorder %v1240_v15, 1 }
 0x110   : > { %vm4655_vm0 = vcmp.eq.s32.totalorder %v5617_v36, 1  ;;  %vm5621_vm6 = vmpackc.low %vm5595_vm11, %vm5620_vm1  ;;  %v5633_v57 = vmov 0  ;;  %vm4720_vm1 = vcmp.eq.s32.totalorder %v1293_v43, 1  ;;  %v1330_v24 = vrot.slane %v4518_v61, %v3207_v32 }
 0x111   : > { %v5619_v48 = vsel %vm4655_vm0, 4294967295, %v5618_v48  ;;  %2600 = vmatpush1.bf16.msk.msra.mxu1 %vm5621_vm6, %v3398_v60  ;;  %vm5626_vm11 = vmpackc.low %vm4534_vm14, %vm4530_vm12  ;;  %vm4697_vm0 = vcmp.eq.s32.totalorder %v1270_v23, 1  ;;  %vm5635_vm14 = vnez %v5597_v14  ;;  %v5645_v47 = vmov 0  ;;  %v1680_v14 = vld [vmem:[%s5118_s3] sm:$0xff] }
 0x112   : > { %2528 = vmatpush1.bf16.msk.msra.mxu0 %vm5626_vm11, %v3512_v9  ;;  %vm5627_vm6 = vmpackc.low %vm5608_vm2, %vm5607_vm15  ;;  %v5632_v9 = vrot.slane %v3630_v4, %v3198_v29  ;;  %vm5637_vm2 = vnez %v5614_v40  ;;  %vm5638_vm11 = vnez %v5616_v13  ;;  %v1379_v2 = vpack.c.bf16 %v1377_v46, %v1377_v46 }
 0x113   : > { %2603 = vmatprep.subr.msk.bf16.mxu1 %vm5627_vm6, %v3576_v6  ;;  %v1360_v6 = vrot.slane %v3630_v4, %v3207_v32  ;;  %vm5636_vm15 = vmpackc.low %vm4576_vm10, %vm5635_vm14  ;;  %v1301_v4 = vrot.slane %v4513_v62, %v3207_v32  ;;  %vm4736_vm14 = vcmp.eq.s32.totalorder %v1305_v55, 1  ;;  %v1670_v55 = vld [vmem:[%s5117_s2] sm:$0xff] }
 0x114   : > { %vm4704_vm12 = vcmp.eq.s32.totalorder %v5632_v9, 1  ;;  %2531 = vmatprep.subr.msk.bf16.mxu0 %vm5636_vm15, %v3711_v56  ;;  %vm2607_vm6 = vmpackc.low %vm5638_vm11, %vm5637_vm2  ;;  %vm4740_vm15 = vcmp.eq.s32.totalorder %v1334_v44, 1  ;;  %vm5648_vm11 = vnez %v5619_v48 }
 0x115   : > { %v5634_v57 = vsel %vm4704_vm12, 4294967295, %v5633_v57  ;;  %vm4724_vm12 = vcmp.eq.s32.totalorder %v1322_v19, 1  ;;  %vm2535_vm10 = vmpackc.low %vm4673_vm5, %vm4669_vm9  ;;  %v5646_v47 = vsel %vm4740_vm15, 4294967295, %v5645_v47  ;;  %vm1368_vm9 = vcmp.eq.s32.totalorder %v1364_v20, 1 }
 0x116   : > { %vm5647_vm2 = vmpackc.low %vm4604_vm4, %vm4600_vm8  ;;  %v1370_v32 = vsel %vm5648_vm11, %v3994_v27, 0.0  ;;  %vm5650_vm4 = vnez %v5634_v57  ;;  %v5651_v27 = vld [vmem:[#allocation7_spill] sm:$0xff] }
 0x117   : > { %2606 = vmatpush1.bf16.msk.msra.mxu1 %vm5647_vm2, %v3580_v8  ;;  %vm2610_vm5 = vmpackc.low %vm4697_vm0, %vm4693_vm7  ;;  %v1369_v8 = vsel %vm5650_vm4, %v3907_v58, 0.0  ;;  %vm1367_vm0 = vcmp.eq.s32.totalorder %v1360_v6, 1  ;;  %vm5652_vm7 = vnez %v5646_v47  ;;  %v1542_v53 = vpack.c.bf16 %v1370_v32, %v1370_v32  ;;  %v5657_v58 = vld [vmem:[#allocation9_spill] sm:$0xff] }
 0x118   : > { %vm5649_vm15 = vmpackc.low %vm4626_vm13, %vm4622_vm3  ;;  %2609 = vmatprep.subr.msk.bf16.mxu1 %vm2607_vm6, %v3709_v51  ;;  %vm4776_vm13 = vcmp.eq.s32.totalorder %v1301_v4, 1  ;;  %vm1337_vm6 = vcmp.eq.s32.totalorder %v1330_v24, 1  ;;  %v5655_v51 = vld [vmem:[#allocation10_spill] sm:$0xff]  ;;  %v1541_v54 = vpack.c.bf16 %v1369_v8, %v1369_v8  ;;  %v1371_v5 = vsel %vm1367_vm0, %v5657_v58, 0.0  ;;  %v5661_v8 = vld [vmem:[#allocation13_spill] sm:$0xff] }
 0x119   : > { %2534 = vmatpush1.bf16.msk.msra.mxu0 %vm5649_vm15, %v3656_v41  ;;  %vm2538_vm8 = vmpackc.low %vm4724_vm12, %vm4720_vm1  ;;  %v1372_v59 = vsel %vm1368_vm9, %v5655_v51, 0.0  ;;  %vm1549_vm1 = vcmask 1043456   ;;  %v1543_v50 = vpack.c.bf16 %v1371_v5, %v1371_v5  ;;  %v5662_v41 = vld [vmem:[#allocation12_spill] sm:$0xff] }
 0x11a   : > { %2537 = vmatprep.subr.msk.bf16.mxu0 %vm2535_vm10, %v5651_v27  ;;  %vm2613_vm3 = vmpackc.low %vm5652_vm7, %vm4736_vm14  ;;  %v1544_v26 = vpack.c.bf16 %v1372_v59, %v1372_v59  ;;  %v1551_v34 = vsel %vm1549_vm1, %v1541_v54, 0  ;;  %v1703_v27 = vmul.f32 2.0, %v5661_v8  ;;  %v1704_v51 = vmul.f32 2.0, %v5662_v41  ;;  %v5663_v59 = vld [vmem:[#allocation11_spill] sm:$0xff] }
 0x11b   : > { %2612 = vmatpush1.bf16.msk.msra.mxu1 %vm2610_vm5, %v5656_v31  ;;  %vm2616_vm12 = vmpackc.low %vm1337_vm6, %vm4776_vm13  ;;  %v1557_v45 = vsel %vm1549_vm1, %v1543_v50, 0  ;;  %v1705_v31 = vmul.f32 2.0, %v5663_v59 }
 0x11c   : > { %2615 = vmatprep.subr.msk.bf16.mxu1 %vm2613_vm3, %v5659_v30 }
 0x11d   : > { %2540 = vmatpush1.bf16.msk.msra.mxu0 %vm2538_vm8, %v5658_v3 }
 0x11e   : > { %2326 = vmatprep.subr.msk.bf16.mxu0 %vm1549_vm1, %v1542_v53  ;;  %v5664_v53 = vld [vmem:[#allocation14_spill] sm:$0xff] }
 0x11f   : > { %2618 = vmatpush1.bf16.msk.msra.mxu1 %vm2616_vm12, %v5660_v7  ;;  %v1702_v54 = vmul.f32 2.0, %v5664_v53 }
 0x120   : > { %2328 = vmatprep.subr.msk.bf16.mxu1 %vm1549_vm1, %v1544_v26 }
 0x121   : > { %1589 = vmatpush1.bf16.msra.mxu0 %v1551_v34 }
 0x123   : > { %1630 = vmatpush1.bf16.msra.mxu1 %v1557_v45 }
 0x124   : > { %1595 = vmatmul.mubr.bf16.vlgmr.msra.gmra.mrb[0].mxu0 %v1379_v2 }
 0x126   : > { %1636 = vmatmul.mubr.bf16.vlgmr.msra.gmra.mrb[0].mxu1 %v1379_v2 }
 0x1f7   : > { %v1596_v63 = vpop.f32.mrb[0].mxu0 }
 0x1f8   : > { %v1598_v62 = vpop.f32.mrb[1].mxu0 }
 0x1f9   : > { %v1644_v61 = vadd.f32 %v1598_v62, %v1596_v63  ;;  %v1600_v21 = vpop.f32.mrb[2].mxu0  ;;  %v1637_v52 = vpop.f32.mrb[0].mxu1 }
 0x1fa   : > { %v1601_v11 = vpop.f32.mrb[3].mxu0  ;;  %v1639_v37 = vpop.f32.mrb[1].mxu1 }
 0x1fb   : > { %v1645_v42 = vadd.f32 %v1644_v61, %v1637_v52  ;;  %v1641_v1 = vpop.f32.mrb[2].mxu1 }
 0x1fc   : > { %v1642_v17 = vpop.f32.mrb[3].mxu1 }
 0x1fd   : > { %v1646_v10 = vadd.f32 %v1645_v42, %v1639_v37 }
 0x1ff   : > { %1647 = vadd.xlane.f32.xlu1 %v1646_v10  ;;  %v3051_v10 = vmov 1.0|1.0  }
 0x210   : > { %1683 = vperm.xlu1 %2947, %v1680_v14  }
 0x28c   : > { %v1648_v35 = vpop.xlane.xlu1 %1647 }
 0x28d   : > { %v1649_v12 = vmul.f32 0.001953125, %v1648_v35 }
 0x28f   : > { %v1650_v18 = vsub.f32 %v1596_v63, %v1649_v12  ;;  %v1651_v49 = vsub.f32 %v1598_v62, %v1649_v12  ;;  %v1652_v0 = vsub.f32 %v1637_v52, %v1649_v12  ;;  %v1653_v15 = vsub.f32 %v1639_v37, %v1649_v12  ;;  %v5665_v62 = vld [vmem:[#allocation3_spill] sm:$0xff] }
 0x290   : > { %v1684_v57 = vpop.permute.xlu1 %1683  ;;  %v1843_v61 = vadd.s32 128, %v5665_v62  ;;  %v1844_v21 = vadd.s32 136, %v5665_v62  ;;  %v4826_v52 = vld [vmem:[%s5122_s7] ss:$0 sm:$0xff]  ;;  %v1875_v42 = vadd.s32 384, %v5665_v62  ;;  %v1876_v1 = vadd.s32 392, %v5665_v62 }
 0x291   : > { %v1654_v23 = vmul.f32 %v1650_v18, %v1650_v18  ;;  %v1655_v16 = vmul.f32 %v1651_v49, %v1651_v49  ;;  %v1656_v22 = vmul.f32 %v1652_v0, %v1652_v0  ;;  %v1657_v19 = vmul.f32 %v1653_v15, %v1653_v15 }
 0x292   : > { %vm1912_vm5 = vcmp.eq.s32.totalorder %v1843_v61, %v4826_v52  ;;  %vm1913_vm9 = vcmp.eq.s32.totalorder %v1844_v21, %v4826_v52  ;;  %vm1944_vm8 = vcmp.eq.s32.totalorder %v1875_v42, %v4826_v52  ;;  %v1828_v17 = vadd.s32 8, %v5665_v62 }
 0x293   : > { %v1658_v43 = vadd.f32 %v1655_v16, %v1654_v23  ;;  %vm2689_vm11 = vmpackc.low %vm1913_vm9, %vm1912_vm5  ;;  %vm1896_vm4 = vcmp.eq.s32.totalorder %v5665_v62, %v4826_v52  ;;  %v1859_v14 = vadd.s32 256, %v5665_v62  ;;  %v1860_v35 = vadd.s32 264, %v5665_v62 }
 0x294   : > { %2690 = vmatprep.subr.msk.bf16.mxu0 %vm2689_vm11, %v3051_v10  ;;  %v1845_v12 = vadd.s32 144, %v5665_v62  ;;  %vm1945_vm0 = vcmp.eq.s32.totalorder %v1876_v1, %v4826_v52  ;;  %vm1897_vm7 = vcmp.eq.s32.totalorder %v1828_v17, %v4826_v52  ;;  %v1830_v23 = vadd.s32 24, %v5665_v62 }
 0x295   : > { %v1659_v40 = vadd.f32 %v1658_v43, %v1656_v22  ;;  %vm2721_vm3 = vmpackc.low %vm1945_vm0, %vm1944_vm8  ;;  %vm1928_vm13 = vcmp.eq.s32.totalorder %v1859_v14, %v4826_v52  ;;  %vm1929_vm6 = vcmp.eq.s32.totalorder %v1860_v35, %v4826_v52  ;;  %v1861_v16 = vadd.s32 272, %v5665_v62 }
 0x296   : > { %vm1914_vm1 = vcmp.eq.s32.totalorder %v1845_v12, %v4826_v52  ;;  %2722 = vmatprep.subr.msk.bf16.mxu1 %vm2721_vm3, %v3051_v10  ;;  %vm2691_vm12 = vmpackc.low %vm1897_vm7, %vm1896_vm4  ;;  %v1862_v22 = vadd.s32 280, %v5665_v62  ;;  %v1847_v43 = vadd.s32 160, %v5665_v62  ;;  %vm1899_vm11 = vcmp.eq.s32.totalorder %v1830_v23, %v4826_v52 }
 0x297   : > { %v1660_v13 = vadd.f32 %v1659_v40, %v1657_v19  ;;  %2692 = vmatpush3.bf16.msk.msra.mxu0 %vm2691_vm12, %v3051_v10  ;;  %v1848_v19 = vadd.s32 168, %v5665_v62  ;;  %v1879_v40 = vadd.s32 416, %v5665_v62  ;;  %vm1930_vm4 = vcmp.eq.s32.totalorder %v1861_v16, %v4826_v52 }
 0x298   : > { %vm1931_vm0 = vcmp.eq.s32.totalorder %v1862_v22, %v4826_v52  ;;  %vm1916_vm7 = vcmp.eq.s32.totalorder %v1847_v43, %v4826_v52  ;;  %v1868_v8 = vadd.s32 328, %v5665_v62  ;;  %v1854_v41 = vadd.s32 216, %v5665_v62 }
 0x299   : > { %1661 = vadd.xlane.f32.xlu0 %v1660_v13  ;;  %v1880_v13 = vadd.s32 424, %v5665_v62  ;;  %v1886_v59 = vadd.s32 472, %v5665_v62  ;;  %v1838_v53 = vadd.s32 88, %v5665_v62  ;;  %v1872_v61 = vadd.s32 360, %v5665_v62 }
 0x29a   : > { %v1857_v21 = vadd.s32 240, %v5665_v62  ;;  %v1858_v42 = vadd.s32 248, %v5665_v62  ;;  %v1890_v1 = vadd.s32 504, %v5665_v62  ;;  %v1841_v17 = vadd.s32 112, %v5665_v62 }
 0x29b   : > { %vm1949_vm12 = vcmp.eq.s32.totalorder %v1880_v13, %v4826_v52  ;;  %v1842_v14 = vadd.s32 120, %v5665_v62  ;;  %v1873_v35 = vadd.s32 368, %v5665_v62  ;;  %v1874_v12 = vadd.s32 376, %v5665_v62 }
 0x2af   : > { %1673 = vperm.xlu0 %2946, %v1670_v55   ;;  %v1831_v55 = vadd.s32 32, %v5665_v62 }
 0x326   : > { %v1662_v44 = vpop.xlane.xlu0 %1661 }
 0x327   : > { %v1663_v20 = vmul.f32 0.001953125, %v1662_v44  ;;  %v1832_v44 = vadd.s32 40, %v5665_v62 }
 0x329   : > { %v1664_v36 = vadd.f32 1e-05, %v1663_v20  ;;  %v1863_v20 = vadd.s32 288, %v5665_v62 }
 0x32b   : > { %3018 = vrsqrt.f32 %v1664_v36  ;;  %v1864_v36 = vadd.s32 296, %v5665_v62 }
 0x32e   : > { %v1674_v28 = vpop.permute.xlu0 %1673 }
 0x335   : > { %v3019_v48 = vpop.eup %3018 }
 0x336   : > { %v1666_v25 = vmul.f32 %v3019_v48, %v1650_v18  ;;  %v1667_v60 = vmul.f32 %v3019_v48, %v1651_v49  ;;  %v1668_v39 = vmul.f32 %v3019_v48, %v1652_v0  ;;  %v1669_v9 = vmul.f32 %v3019_v48, %v1653_v15 }
 0x337   : > { %v1846_v18 = vadd.s32 152, %v5665_v62  ;;  %v1877_v49 = vadd.s32 400, %v5665_v62  ;;  %v1878_v0 = vadd.s32 408, %v5665_v62  ;;  %v1829_v15 = vadd.s32 16, %v5665_v62 }
 0x338   : > { %v1676_v6 = vmul.f32 %v1674_v28, %v1666_v25  ;;  %v1677_v29 = vmul.f32 %v1674_v28, %v1667_v60  ;;  %v1678_v38 = vmul.f32 %v1674_v28, %v1668_v39  ;;  %v1679_v4 = vmul.f32 %v1674_v28, %v1669_v9 }
 0x339   : > { %vm1898_vm9 = vcmp.eq.s32.totalorder %v1829_v15, %v4826_v52  ;;  %v1849_v48 = vadd.s32 176, %v5665_v62  ;;  %v1850_v28 = vadd.s32 184, %v5665_v62  ;;  %v1881_v25 = vadd.s32 432, %v5665_v62 }
 0x33a   : > { %v1686_v24 = vadd.f32 %v1684_v57, %v1676_v6  ;;  %v1687_v56 = vadd.f32 %v1684_v57, %v1677_v29  ;;  %v1688_v47 = vadd.f32 %v1684_v57, %v1678_v38  ;;  %v1689_v32 = vadd.f32 %v1684_v57, %v1679_v4  ;;  %vm2695_vm3 = vmpackc.low %vm1899_vm11, %vm1898_vm9 }
 0x33b   : > { %vm1933_vm9 = vcmp.eq.s32.totalorder %v1864_v36, %v4826_v52  ;;  %vm1918_vm11 = vcmp.eq.s32.totalorder %v1849_v48, %v4826_v52  ;;  %v1882_v60 = vadd.s32 440, %v5665_v62  ;;  %v1833_v39 = vadd.s32 48, %v5665_v62 }
 0x33c   : > { %vm1690_vm10 = vcmp.ge.f32.partialorder %v1686_v24, 0.0  ;;  %vm1691_vm14 = vcmp.ge.f32.partialorder %v1687_v56, 0.0  ;;  %vm1692_vm15 = vcmp.ge.f32.partialorder %v1688_v47, 0.0  ;;  %vm1693_vm2 = vcmp.ge.f32.partialorder %v1689_v32, 0.0 }
 0x33d   : > { %v1694_v58 = vmul.f32 0.01, %v1686_v24  ;;  %v1695_v5 = vmul.f32 0.01, %v1687_v56  ;;  %v1696_v3 = vmul.f32 0.01, %v1688_v47 }
 0x33e   : > { %v1697_v30 = vmul.f32 0.01, %v1689_v32  ;;  %v1834_v9 = vadd.s32 56, %v5665_v62  ;;  %v1865_v57 = vadd.s32 304, %v5665_v62  ;;  %v1866_v6 = vadd.s32 312, %v5665_v62 }
 0x33f   : > { %v1698_v46 = vsel %vm1690_vm10, %v1686_v24, %v1694_v58  ;;  %v1699_v26 = vsel %vm1691_vm14, %v1687_v56, %v1695_v5  ;;  %v1700_v50 = vsel %vm1692_vm15, %v1688_v47, %v1696_v3  ;;  %vm1915_vm10 = vcmp.eq.s32.totalorder %v1846_v18, %v4826_v52  ;;  %vm2723_vm15 = vmpackc.low %vm1929_vm6, %vm1928_vm13 }
 0x340   : > { %v1701_v7 = vsel %vm1693_vm2, %v1689_v32, %v1697_v30  ;;  %v4806_v34 = vadd.f32 %v1702_v54, %v1698_v46  ;;  %v4808_v2 = vadd.f32 %v1703_v27, %v1699_v26  ;;  %v4810_v45 = vadd.f32 %v1704_v51, %v1700_v50  ;;  %2724 = vmatpush3.bf16.msk.msra.mxu1 %vm2723_vm15, %v3051_v10  ;;  %vm2693_vm5 = vmpackc.low %vm1915_vm10, %vm1914_vm1 }
 0x341   : > { %v4812_v63 = vadd.f32 %v1705_v31, %v1701_v7  ;;  %vm1946_vm14 = vcmp.eq.s32.totalorder %v1877_v49, %v4826_v52  ;;  %vm1947_vm2 = vcmp.eq.s32.totalorder %v1878_v0, %v4826_v52  ;;  %2694 = vmatprep.subr.msk.bf16.mxu0 %vm2693_vm5, %v3051_v10  ;;  %vm1917_vm13 = vcmp.eq.s32.totalorder %v1848_v19, %v4826_v52  ;;  %vm2727_vm1 = vmpackc.low %vm1931_vm0, %vm1930_vm4 }
 0x342   : > { %1710 = vst [vmem:[%s339_s23] sm:$0xff] %v4806_v34  ;;  %1711 = vst [vmem:[%s339_s23 + $0x8] sm:$0xff] %v4808_v2  ;;  %v4821_v11 = vpack.i.bf16 %v4808_v2, %v4806_v34  ;;  %vm1948_vm6 = vcmp.eq.s32.totalorder %v1879_v40, %v4826_v52  ;;  %2696 = vmatpush3.bf16.msk.msra.mxu0 %vm2695_vm3, %v3051_v10  ;;  %vm1901_vm15 = vcmp.eq.s32.totalorder %v1832_v44, %v4826_v52 }
 0x343   : > { %1712 = vst [vmem:[%s339_s23 + $0x10] sm:$0xff] %v4810_v45  ;;  %1713 = vst [vmem:[%s339_s23 + $0x18] sm:$0xff] %v4812_v63  ;;  %v4832_v37 = vpack.i.bf16 %v4812_v63, %v4810_v45  ;;  %vm1932_vm5 = vcmp.eq.s32.totalorder %v1863_v20, %v4826_v52  ;;  %vm1919_vm4 = vcmp.eq.s32.totalorder %v1850_v28, %v4826_v52  ;;  %v1851_v29 = vadd.s32 192, %v5665_v62 }
 0x344   : > { %2949 = vrot.lane.b32.xlu1 %v4821_v11, %s3047_s29  ;;  %vm2725_vm8 = vmpackc.low %vm1947_vm2, %vm1946_vm14  ;;  %vm1900_vm14 = vcmp.eq.s32.totalorder %v1831_v55, %v4826_v52  ;;  %vm1950_vm0 = vcmp.eq.s32.totalorder %v1881_v25, %v4826_v52  ;;  %vm1951_vm3 = vcmp.eq.s32.totalorder %v1882_v60, %v4826_v52  ;;  %v1852_v38 = vadd.s32 200, %v5665_v62 }
 0x345   : > { %2984 = vrot.lane.b32.xlu0 %v4832_v37, %s3038_s20  ;;  %2726 = vmatprep.subr.msk.bf16.mxu1 %vm2725_vm8, %v3051_v10  ;;  %vm2697_vm10 = vmpackc.low %vm1917_vm13, %vm1916_vm7  ;;  %v1883_v4 = vadd.s32 448, %v5665_v62  ;;  %v1884_v24 = vadd.s32 456, %v5665_v62  ;;  %v1835_v56 = vadd.s32 64, %v5665_v62  ;;  %v1836_v47 = vadd.s32 72, %v5665_v62 }
 0x346   : > { %2728 = vmatpush3.bf16.msk.msra.mxu1 %vm2727_vm1, %v3051_v10  ;;  %2698 = vmatprep.subr.msk.bf16.mxu0 %vm2697_vm10, %v3051_v10  ;;  %vm2729_vm2 = vmpackc.low %vm1949_vm12, %vm1948_vm6  ;;  %vm1902_vm6 = vcmp.eq.s32.totalorder %v1833_v39, %v4826_v52  ;;  %vm1903_vm1 = vcmp.eq.s32.totalorder %v1834_v9, %v4826_v52  ;;  %vm1934_vm10 = vcmp.eq.s32.totalorder %v1865_v57, %v4826_v52  ;;  %v1867_v32 = vadd.s32 320, %v5665_v62 }
 0x347   : > { %2730 = vmatprep.subr.msk.bf16.mxu1 %vm2729_vm2, %v3051_v10  ;;  %vm2699_vm8 = vmpackc.low %vm1901_vm15, %vm1900_vm14  ;;  %vm1935_vm14 = vcmp.eq.s32.totalorder %v1866_v6, %v4826_v52  ;;  %vm1920_vm15 = vcmp.eq.s32.totalorder %v1851_v29, %v4826_v52  ;;  %v1853_v27 = vadd.s32 208, %v5665_v62  ;;  %v1885_v51 = vadd.s32 464, %v5665_v62 }
 0x348   : > { %2954 = vrot.lane.b32.xlu1 %v4832_v37, %s3047_s29  ;;  %2700 = vmatpush3.bf16.msk.msra.mxu0 %vm2699_vm8, %v3051_v10  ;;  %vm2731_vm7 = vmpackc.low %vm1933_vm9, %vm1932_vm5  ;;  %vm1921_vm5 = vcmp.eq.s32.totalorder %v1852_v38, %v4826_v52  ;;  %vm1952_vm9 = vcmp.eq.s32.totalorder %v1883_v4, %v4826_v52  ;;  %vm1953_vm8 = vcmp.eq.s32.totalorder %v1884_v24, %v4826_v52  ;;  %v1837_v31 = vadd.s32 80, %v5665_v62 }
 0x349   : > { %2994 = vrot.lane.b32.xlu0 %v4832_v37, %s3037_s19  ;;  %vm2701_vm13 = vmpackc.low %vm1919_vm4, %vm1918_vm11  ;;  %v1869_v54 = vadd.s32 336, %v5665_v62  ;;  %v1870_v58 = vadd.s32 344, %v5665_v62  ;;  %v1855_v5 = vadd.s32 224, %v5665_v62  ;;  %v1856_v3 = vadd.s32 232, %v5665_v62 }
 0x34a   : > { %2732 = vmatpush3.bf16.msk.msra.mxu1 %vm2731_vm7, %v3051_v10  ;;  %2702 = vmatprep.subr.msk.bf16.mxu0 %vm2701_vm13, %v3051_v10  ;;  %vm2733_vm12 = vmpackc.low %vm1951_vm3, %vm1950_vm0  ;;  %vm1904_vm0 = vcmp.eq.s32.totalorder %v1835_v56, %v4826_v52  ;;  %vm1905_vm7 = vcmp.eq.s32.totalorder %v1836_v47, %v4826_v52  ;;  %vm1936_vm13 = vcmp.eq.s32.totalorder %v1867_v32, %v4826_v52  ;;  %v1887_v30 = vadd.s32 480, %v5665_v62 }
 0x34b   : > { %2734 = vmatprep.subr.msk.bf16.mxu1 %vm2733_vm12, %v3051_v10  ;;  %vm2703_vm2 = vmpackc.low %vm1903_vm1, %vm1902_vm6  ;;  %vm1937_vm6 = vcmp.eq.s32.totalorder %v1868_v8, %v4826_v52  ;;  %vm1922_vm1 = vcmp.eq.s32.totalorder %v1853_v27, %v4826_v52  ;;  %v1888_v46 = vadd.s32 488, %v5665_v62  ;;  %v1839_v26 = vadd.s32 96, %v5665_v62 }
 0x34c   : > { %2959 = vrot.lane.b32.xlu1 %v4821_v11, %s3049_s13  ;;  %2704 = vmatpush3.bf16.msk.msra.mxu0 %vm2703_vm2, %v3051_v10  ;;  %vm2735_vm11 = vmpackc.low %vm1935_vm14, %vm1934_vm10  ;;  %vm1923_vm10 = vcmp.eq.s32.totalorder %v1854_v41, %v4826_v52  ;;  %vm1954_vm14 = vcmp.eq.s32.totalorder %v1885_v51, %v4826_v52  ;;  %vm1955_vm2 = vcmp.eq.s32.totalorder %v1886_v59, %v4826_v52  ;;  %v1840_v50 = vadd.s32 104, %v5665_v62 }
 0x34d   : > { %3004 = vrot.lane.b32.xlu0 %v4832_v37, %s3039_s21  ;;  %vm2705_vm4 = vmpackc.low %vm1921_vm5, %vm1920_vm15  ;;  %v1871_v7 = vadd.s32 352, %v5665_v62 }
 0x34e   : > { %2736 = vmatpush3.bf16.msk.msra.mxu1 %vm2735_vm11, %v3051_v10  ;;  %2706 = vmatprep.subr.msk.bf16.mxu0 %vm2705_vm4, %v3051_v10  ;;  %vm2737_vm3 = vmpackc.low %vm1953_vm8, %vm1952_vm9  ;;  %vm1906_vm9 = vcmp.eq.s32.totalorder %v1837_v31, %v4826_v52  ;;  %vm1907_vm11 = vcmp.eq.s32.totalorder %v1838_v53, %v4826_v52  ;;  %vm1938_vm4 = vcmp.eq.s32.totalorder %v1869_v54, %v4826_v52 }
 0x34f   : > { %2738 = vmatprep.subr.msk.bf16.mxu1 %vm2737_vm3, %v3051_v10  ;;  %vm2707_vm12 = vmpackc.low %vm1905_vm7, %vm1904_vm0  ;;  %vm1939_vm0 = vcmp.eq.s32.totalorder %v1870_v58, %v4826_v52  ;;  %vm1924_vm7 = vcmp.eq.s32.totalorder %v1855_v5, %v4826_v52 }
 0x350   : > { %2964 = vrot.lane.b32.xlu1 %v4832_v37, %s3049_s13  ;;  %2708 = vmatpush3.bf16.msk.msra.mxu0 %vm2707_vm12, %v3051_v10  ;;  %vm2739_vm15 = vmpackc.low %vm1937_vm6, %vm1936_vm13  ;;  %vm1925_vm13 = vcmp.eq.s32.totalorder %v1856_v3, %v4826_v52  ;;  %vm1956_vm6 = vcmp.eq.s32.totalorder %v1887_v30, %v4826_v52  ;;  %vm1957_vm12 = vcmp.eq.s32.totalorder %v1888_v46, %v4826_v52 }
 0x351   : > { %3014 = vrot.lane.b32.xlu0 %v4832_v37, %s3042_s24  ;;  %vm2709_vm5 = vmpackc.low %vm1923_vm10, %vm1922_vm1 }
 0x352   : > { %2740 = vmatpush3.bf16.msk.msra.mxu1 %vm2739_vm15, %v3051_v10  ;;  %2710 = vmatprep.subr.msk.bf16.mxu0 %vm2709_vm5, %v3051_v10  ;;  %vm2741_vm8 = vmpackc.low %vm1955_vm2, %vm1954_vm14  ;;  %vm1908_vm14 = vcmp.eq.s32.totalorder %v1839_v26, %v4826_v52  ;;  %vm1909_vm15 = vcmp.eq.s32.totalorder %v1840_v50, %v4826_v52  ;;  %vm1940_vm5 = vcmp.eq.s32.totalorder %v1871_v7, %v4826_v52 }
 0x353   : > { %2742 = vmatprep.subr.msk.bf16.mxu1 %vm2741_vm8, %v3051_v10  ;;  %vm2711_vm3 = vmpackc.low %vm1907_vm11, %vm1906_vm9  ;;  %vm1941_vm9 = vcmp.eq.s32.totalorder %v1872_v61, %v4826_v52  ;;  %vm1926_vm11 = vcmp.eq.s32.totalorder %v1857_v21, %v4826_v52 }
 0x354   : > { %2969 = vrot.lane.b32.xlu1 %v4821_v11, %s3048_s12  ;;  %2712 = vmatpush3.bf16.msk.msra.mxu0 %vm2711_vm3, %v3051_v10  ;;  %vm2743_vm1 = vmpackc.low %vm1939_vm0, %vm1938_vm4  ;;  %vm1927_vm4 = vcmp.eq.s32.totalorder %v1858_v42, %v4826_v52  ;;  %vm1959_vm3 = vcmp.eq.s32.totalorder %v1890_v1, %v4826_v52 }
 0x355   : > { %vm2713_vm10 = vmpackc.low %vm1925_vm13, %vm1924_vm7 }
 0x356   : > { %2744 = vmatpush3.bf16.msk.msra.mxu1 %vm2743_vm1, %v3051_v10  ;;  %2714 = vmatprep.subr.msk.bf16.mxu0 %vm2713_vm10, %v3051_v10  ;;  %vm2745_vm2 = vmpackc.low %vm1957_vm12, %vm1956_vm6  ;;  %vm1910_vm6 = vcmp.eq.s32.totalorder %v1841_v17, %v4826_v52  ;;  %vm1911_vm1 = vcmp.eq.s32.totalorder %v1842_v14, %v4826_v52  ;;  %vm1942_vm10 = vcmp.eq.s32.totalorder %v1873_v35, %v4826_v52 }
 0x357   : > { %2746 = vmatprep.subr.msk.bf16.mxu1 %vm2745_vm2, %v3051_v10  ;;  %vm2715_vm8 = vmpackc.low %vm1909_vm15, %vm1908_vm14  ;;  %vm1943_vm14 = vcmp.eq.s32.totalorder %v1874_v12, %v4826_v52 }
 0x358   : > { %2974 = vrot.lane.b32.xlu1 %v4832_v37, %s3048_s12  ;;  %v1889_v37 = vadd.s32 496, %v5665_v62  ;;  %2716 = vmatpush3.bf16.msk.msra.mxu0 %vm2715_vm8, %v3051_v10  ;;  %vm2747_vm7 = vmpackc.low %vm1941_vm9, %vm1940_vm5  ;;  %vm5666_vm5 = vcmp.lt.s32.totalorder %v3209_v33, 127  ;;  %vm5667_vm9 = vcmp.lt.s32.totalorder %v3209_v33, 120 }
 0x359   : > { %vm2717_vm13 = vmpackc.low %vm1927_vm4, %vm1926_vm11  ;;  %vm5670_vm4 = vcmp.lt.s32.totalorder %v3209_v33, 119 }
 0x35a   : > { %vm1958_vm0 = vcmp.eq.s32.totalorder %v1889_v37, %v4826_v52  ;;  %2748 = vmatpush3.bf16.msk.msra.mxu1 %vm2747_vm7, %v3051_v10  ;;  %2718 = vmatprep.subr.msk.bf16.mxu0 %vm2717_vm13, %v3051_v10  ;;  %vm2719_vm15 = vmpackc.low %vm1911_vm1, %vm1910_vm6  ;;  %vm5674_vm13 = vcmp.lt.s32.totalorder %v3209_v33, 63 }
 0x35b   : > { %vm2749_vm12 = vmpackc.low %vm1959_vm3, %vm1958_vm0  ;;  %vm5673_vm3 = vcmp.lt.s32.totalorder %v3209_v33, 64 }
 0x35c   : > { %2979 = vrot.lane.b32.xlu1 %v4821_v11, %s3038_s20  ;;  %2750 = vmatprep.subr.msk.bf16.mxu1 %vm2749_vm12, %v3051_v10  ;;  %vm2751_vm2 = vmpackc.low %vm1943_vm14, %vm1942_vm10 }
 0x35d   : > { %2720 = vmatpush3.bf16.msk.msra.mxu0 %vm2719_vm15, %v3051_v10  ;;  %vm5668_vm11 = vmmov %vm5666_vm5 }
 0x35e   : > { %2752 = vmatpush3.bf16.msk.msra.mxu1 %vm2751_vm2, %v3051_v10  ;;  %vm5669_vm8 = vmmov %vm5666_vm5 }
 0x35f   : > { %vm5671_vm0 = vmmov %vm5666_vm5 }
 0x360   : > { %2989 = vrot.lane.b32.xlu1 %v4821_v11, %s3037_s19  ;;  %vm5672_vm7 = vmmov %vm5667_vm9  ;;  %s2325_s19 = sshll.u32 %s5695_s10, 3 }
 0x361   : > { %vm5675_vm6 = vmmov %vm5672_vm7 }
 0x362   : > { %vm5676_vm1 = vmmov %vm5675_vm6 }
 0x363   : > { %vm5677_vm12 = vmmov %vm5670_vm4 }
 0x364   : > { %2999 = vrot.lane.b32.xlu1 %v4821_v11, %s3039_s21  ;;  %vm5678_vm10 = vmmov %vm5670_vm4 }
 0x365   : > { %vm5679_vm14 = vmmov %vm5670_vm4 }
 0x366   : > { %vm5680_vm15 = vmmov %vm5673_vm3 }
 0x367   : > { %vm5681_vm2 = vmmov %vm5673_vm3 }
 0x368   : > { %3009 = vrot.lane.b32.xlu1 %v4821_v11, %s3042_s24  ;;  %s343_s24 = scalar_lea.vmem %s5124_s9, %s2325_s19 }
 0x3b6   : > { %v2950_v62 = vpop.permute.xlu1 %2949 }
 0x3b7   : > { %v2985_v15 = vpop.permute.xlu0 %2984  ;;  %v2952_v40 = vunpack.i.h.bf16 %v2950_v62  ;;  %v2951_v13 = vunpack.i.l.bf16 %v2950_v62 }
 0x3b8   : > { %v2987_v10 = vunpack.i.h.bf16 %v2985_v15  ;;  %v2986_v60 = vunpack.i.l.bf16 %v2985_v15 }
 0x3b9   : > { %v1724_v6 = vsel %vm5668_vm11, %v2951_v13, %v2952_v40 }
 0x3ba   : > { %v2955_v18 = vpop.permute.xlu1 %2954  ;;  %v1770_v8 = vsel %vm5673_vm3, %v2986_v60, %v2987_v10  ;;  %v1726_v27 = vmax.f32 %v4806_v34, %v1724_v6 }
 0x3bb   : > { %v2957_v23 = vunpack.i.h.bf16 %v2955_v18  ;;  %v2956_v16 = vunpack.i.l.bf16 %v2955_v18  ;;  %v2995_v55 = vpop.permute.xlu0 %2994 }
 0x3bc   : > { %v2997_v39 = vunpack.i.h.bf16 %v2995_v55  ;;  %v2996_v9 = vunpack.i.l.bf16 %v2995_v55 }
 0x3bd   : > { %v1722_v19 = vsel %vm5666_vm5, %v2956_v16, %v2957_v23  ;;  %v1723_v29 = vsel %vm5669_vm8, %v2952_v40, %v2956_v16  ;;  %v1725_v47 = vsel %vm5671_vm0, %v2957_v23, %v2951_v13  ;;  %vm5682_vm5 = vmmov %vm5681_vm2 }
 0x3be   : > { %v2960_v49 = vpop.permute.xlu1 %2959  ;;  %v1728_v44 = vmax.f32 %v4810_v45, %v1722_v19  ;;  %v1786_v41 = vsel %vm5674_vm13, %v2996_v9, %v2997_v39  ;;  %v1727_v51 = vmax.f32 %v4808_v2, %v1723_v29  ;;  %v1729_v5 = vmax.f32 %v4812_v63, %v1725_v47 }
 0x3bf   : > { %v2962_v36 = vunpack.i.h.bf16 %v2960_v49  ;;  %v2961_v48 = vunpack.i.l.bf16 %v2960_v49  ;;  %v3005_v59 = vpop.permute.xlu0 %3004 }
 0x3c0   : > { %v3007_v61 = vunpack.i.h.bf16 %v3005_v59  ;;  %v3006_v21 = vunpack.i.l.bf16 %v3005_v59 }
 0x3c1   : > { %v1740_v32 = vsel %vm5672_vm7, %v2961_v48, %v2962_v36 }
 0x3c2   : > { %v2965_v0 = vpop.permute.xlu1 %2964  ;;  %v1742_v3 = vmax.f32 %v1726_v27, %v1740_v32 }
 0x3c3   : > { %v2967_v22 = vunpack.i.h.bf16 %v2965_v0  ;;  %v2966_v52 = vunpack.i.l.bf16 %v2965_v0  ;;  %v3015_v35 = vpop.permute.xlu0 %3014 }
 0x3c4   : > { %v3017_v13 = vunpack.i.h.bf16 %v3015_v35 }
 0x3c5   : > { %v1738_v11 = vsel %vm5667_vm9, %v2966_v52, %v2967_v22  ;;  %v1739_v31 = vsel %vm5675_vm6, %v2962_v36, %v2966_v52  ;;  %v1741_v53 = vsel %vm5676_vm1, %v2967_v22, %v2961_v48  ;;  %vm5683_vm9 = vmmov %vm5674_vm13  ;;  %vm5690_vm13 = vcmp.lt.s32.totalorder %v3209_v33, 55 }
 0x3c6   : > { %v2970_v43 = vpop.permute.xlu1 %2969  ;;  %v1744_v57 = vmax.f32 %v1728_v44, %v1738_v11  ;;  %v1743_v42 = vmax.f32 %v1727_v51, %v1739_v31  ;;  %v1745_v37 = vmax.f32 %v1729_v5, %v1741_v53  ;;  %vm5684_vm11 = vmmov %vm5683_vm9  ;;  %v3016_v44 = vunpack.i.l.bf16 %v3015_v35 }
 0x3c7   : > { %v2972_v4 = vunpack.i.h.bf16 %v2970_v43  ;;  %v2971_v45 = vunpack.i.l.bf16 %v2970_v43  ;;  %vm5685_vm8 = vmmov %vm5683_vm9 }
 0x3c8   : > { %vm5691_vm6 = vmmov %vm5690_vm13 }
 0x3c9   : > { %v1756_v34 = vsel %vm5677_vm12, %v2971_v45, %v2972_v4  ;;  %vm5692_vm1 = vmmov %vm5691_vm6 }
 0x3ca   : > { %v2975_v20 = vpop.permute.xlu1 %2974  ;;  %v1758_v1 = vmax.f32 %v1742_v3, %v1756_v34  ;;  %vm5693_vm12 = vmmov %vm5692_vm1 }
 0x3cb   : > { %v2977_v28 = vunpack.i.h.bf16 %v2975_v20  ;;  %v2976_v25 = vunpack.i.l.bf16 %v2975_v20 }
 0x3cd   : > { %v1754_v38 = vsel %vm5670_vm4, %v2976_v25, %v2977_v28  ;;  %v1755_v2 = vsel %vm5678_vm10, %v2972_v4, %v2976_v25  ;;  %v1757_v26 = vsel %vm5679_vm14, %v2977_v28, %v2971_v45  ;;  %vm5686_vm4 = vcmp.lt.s32.totalorder %v3209_v33, 56 }
 0x3ce   : > { %v1760_v24 = vmax.f32 %v1744_v57, %v1754_v38  ;;  %v2980_v56 = vpop.permute.xlu1 %2979  ;;  %v1759_v12 = vmax.f32 %v1743_v42, %v1755_v2  ;;  %v1761_v62 = vmax.f32 %v1745_v37, %v1757_v26  ;;  %v1802_v52 = vsel %vm5686_vm4, %v3006_v21, %v3007_v61  ;;  %vm5687_vm0 = vmmov %vm5686_vm4 }
 0x3cf   : > { %v2982_v54 = vunpack.i.h.bf16 %v2980_v56  ;;  %v2981_v58 = vunpack.i.l.bf16 %v2980_v56  ;;  %vm5688_vm7 = vmmov %vm5687_vm0  ;;  %v1818_v45 = vsel %vm5693_vm12, %v3016_v44, %v3017_v13  ;;  %vm2228_vm10 = vcmask 523264  }
 0x3d0   : > { %v1776_v30 = vmax.f32 %v1760_v24, %v1770_v8  ;;  %vm5689_vm3 = vmmov %vm5687_vm0 }
 0x3d1   : > { %v1771_v63 = vsel %vm5680_vm15, %v2982_v54, %v2986_v60  ;;  %v1772_v17 = vsel %vm5681_vm2, %v2981_v58, %v2982_v54  ;;  %v1773_v14 = vsel %vm5682_vm5, %v2987_v10, %v2981_v58 }
 0x3d2   : > { %v2990_v46 = vpop.permute.xlu1 %2989  ;;  %v1792_v18 = vmax.f32 %v1776_v30, %v1786_v41  ;;  %v1774_v43 = vmax.f32 %v1758_v1, %v1772_v17  ;;  %v1775_v19 = vmax.f32 %v1759_v12, %v1771_v63  ;;  %v1777_v40 = vmax.f32 %v1761_v62, %v1773_v14 }
 0x3d3   : > { %v2992_v50 = vunpack.i.h.bf16 %v2990_v46  ;;  %v2991_v7 = vunpack.i.l.bf16 %v2990_v46 }
 0x3d5   : > { %v1787_v49 = vsel %vm5683_vm9, %v2992_v50, %v2996_v9  ;;  %v1788_v15 = vsel %vm5684_vm11, %v2991_v7, %v2992_v50  ;;  %v1789_v23 = vsel %vm5685_vm8, %v2997_v39, %v2991_v7  ;;  %v1808_v39 = vmax.f32 %v1792_v18, %v1802_v52 }
 0x3d6   : > { %v3000_v0 = vpop.permute.xlu1 %2999  ;;  %v1790_v20 = vmax.f32 %v1774_v43, %v1788_v15  ;;  %v1791_v36 = vmax.f32 %v1775_v19, %v1787_v49  ;;  %v1793_v48 = vmax.f32 %v1777_v40, %v1789_v23 }
 0x3d7   : > { %v3002_v16 = vunpack.i.h.bf16 %v3000_v0  ;;  %v3001_v22 = vunpack.i.l.bf16 %v3000_v0  ;;  %v1824_v32 = vmax.f32 %v1808_v39, %v1818_v45 }
 0x3d9   : > { %v1803_v55 = vsel %vm5687_vm0, %v3002_v16, %v3006_v21  ;;  %v1804_v11 = vsel %vm5688_vm7, %v3001_v22, %v3002_v16  ;;  %v1805_v10 = vsel %vm5689_vm3, %v3007_v61, %v3001_v22 }
 0x3da   : > { %v3010_v28 = vpop.permute.xlu1 %3009  ;;  %v1806_v9 = vmax.f32 %v1790_v20, %v1804_v11  ;;  %v1807_v57 = vmax.f32 %v1791_v36, %v1803_v55  ;;  %v1809_v6 = vmax.f32 %v1793_v48, %v1805_v10 }
 0x3db   : > { %v3012_v25 = vunpack.i.h.bf16 %v3010_v28  ;;  %v3011_v60 = vunpack.i.l.bf16 %v3010_v28 }
 0x3dd   : > { %v1820_v29 = vsel %vm5690_vm13, %v3011_v60, %v3012_v25  ;;  %v1819_v38 = vsel %vm5691_vm6, %v3012_v25, %v3016_v44  ;;  %v1821_v4 = vsel %vm5692_vm1, %v3017_v13, %v3011_v60 }
 0x3de   : > { %v1822_v24 = vmax.f32 %v1806_v9, %v1820_v29  ;;  %v1823_v56 = vmax.f32 %v1807_v57, %v1819_v38  ;;  %v1825_v47 = vmax.f32 %v1809_v6, %v1821_v4 }
 0x3e0   : > { %2152 = vmatprep.mubr.f32.mxu0 %v1823_v56  ;;  %2222 = vmatprep.mubr.f32.mxu1 %v1825_v47 }
 0x3e1   : > { %2153 = vmatmul.mubr.f32.vlgmr.msra.gmra.mrb[4].mxu0 %v1822_v24  ;;  %2223 = vmatmul.mubr.f32.vlgmr.msra.gmra.mrb[4].mxu1 %v1824_v32 }
 0x4b4   : > { %v2651_v8 = vpop.f32.mrb[4].mxu0  ;;  %v2686_v27 = vpop.f32.mrb[4].mxu1 }
 0x4b5   : > { %v2652_v41 = vpop.f32.mrb[5].mxu0  ;;  %v2687_v51 = vpop.f32.mrb[5].mxu1 }
 0x4b6   : > { %v2653_v59 = vadd.f32 %v2652_v41, %v2651_v8  ;;  %v2688_v31 = vadd.f32 %v2687_v51, %v2686_v27 }
 0x4b8   : > { %v2225_v33 = vadd.f32 %v2688_v31, %v2653_v59 }
 0x4ba   : > { %2229 = vst.msk [vmem:[%s343_s24] sm:$0xff] %vm2228_vm10, %v2225_v33 }
 0x4bb PF: > { %s20_s30 = sadd.s32 1, %s3030_s30  }
 0x4bc   : > { %p17_p4 = scmp.ge.s32.totalorder %s20_s30, 4  }
 0x4be   :  { %19 = sbr.rel (!%p17_p4) target bundleno = 1 (0x1), region = 94 }

</bundles_post_ra>
